<compile_context>
chip_gen: v6e
topology: v6e:2x2x1
jax: 0.10.0
libtpu: 0.0.40
codegen_flags: <defaults>
</compile_context>

<pallas_src>
from functools import partial

import numpy as np
import jax
import jax.numpy as jnp
from jax import lax
from jax.experimental import pallas as pl
from jax.experimental.pallas import tpu as pltpu


def _round_up(x, m):
    return ((x + m - 1) // m) * m


def _rep_spec(shape):
    """BlockSpec for a weight replicated across a 1-D grid (full-array block)."""
    n = len(shape)
    return pl.BlockSpec(shape, lambda g, _n=n: (0,) * _n)


# ----------------------------------------------------------------------------
# Pallas kernels
# ----------------------------------------------------------------------------
def encoder_kernel(pg_ref, w1, b1, w2, b2, w3g, w3h, b3, w4, b4, out_ref,
                   *, gt, n_pad, n_valid):
    """Point-group Encoder (1x1-conv MLPs + max pools), GT groups per grid step.

    pg_ref:  (GT, Np, 3)  point groups (rows >= n_valid are zero padding)
    out_ref: (GT, C)      per-group global feature (lane-dense 2-D output)
    """
    bf16 = jnp.bfloat16
    f32 = jnp.float32

    x = pg_ref[...].reshape(gt * n_pad, 3).astype(bf16)
    # first_conv: Conv(3,128) + BN(folded) + ReLU + Conv(128,256)
    h = jnp.dot(x, w1[...], preferred_element_type=f32) + b1[...]
    h = jnp.maximum(h, 0.0)
    h = jnp.dot(h.astype(bf16), w2[...], preferred_element_type=f32) + b2[...]
    h3 = h.reshape(gt, n_pad, -1)                                     # (GT,Np,256)

    if n_pad != n_valid:
        rmask = lax.broadcasted_iota(jnp.int32, (gt, n_pad, 1), 1) < n_valid
        g = jnp.max(jnp.where(rmask, h3, -1e30), axis=1)              # (GT, 256)
    else:
        g = jnp.max(h3, axis=1)

    # second_conv on concat([global, point])  ==  point @ w3h + global @ w3g
    f = jnp.dot(h.astype(bf16), w3h[...], preferred_element_type=f32)
    gg = jnp.dot(g.astype(bf16), w3g[...], preferred_element_type=f32)
    f = f.reshape(gt, n_pad, -1) + gg[:, None, :] + b3[...]
    f = jnp.maximum(f, 0.0)                                           # BN folded
    f = jnp.dot(f.reshape(gt * n_pad, -1).astype(bf16), w4[...],
                preferred_element_type=f32) + b4[...]
    f = f.reshape(gt, n_pad, -1)                                      # (GT,Np,C)

    if n_pad != n_valid:
        rmask = lax.broadcasted_iota(jnp.int32, (gt, n_pad, 1), 1) < n_valid
        f = jnp.where(rmask, f, -1e30)
    out_ref[...] = jnp.max(f, axis=1)                                 # (GT, C)


def tblocks_kernel(x_ref, pos_ref, ln1g_ref, ln1b_ref, wqkvT_ref, wproj_ref,
                   bproj_ref, ln2g_ref, ln2b_ref, w1_ref, b1_ref, w2_ref, b2_ref,
                   o_ref, *, depth, num_heads, head_dim, scale, n_valid):
    """Fused pre-norm Transformer stack (x = Block(x + pos), `depth` times) for
    one batch row.  Per-layer weights are stacked along a leading depth axis and
    indexed dynamically inside the loop; activations stay resident."""
    bf16 = jnp.bfloat16
    f32 = jnp.float32
    x0 = x_ref[0]                                                     # (Np, D)
    pos = pos_ref[0]
    n_pad, dim = x0.shape

    def layer_norm(v, g, b):
        mu = jnp.mean(v, axis=-1, keepdims=True)
        var = jnp.mean((v - mu) ** 2, axis=-1, keepdims=True)
        return (v - mu) * lax.rsqrt(var + 1e-5) * g + b

    def layer(l, x):
        xp = x + pos
        xn = layer_norm(xp, ln1g_ref[l], ln1b_ref[l])

        # ---- attention (head-batched, no transposes, qkv kept channel-major) --
        # qkv^T : (3D, Np) = Wqkv^T contracted against xn  (A @ B^T form)
        qkvT = lax.dot_general(wqkvT_ref[l], xn.astype(bf16),
                               (((1,), (1,)), ((), ())),
                               preferred_element_type=f32)
        qT = qkvT[0:dim].reshape(num_heads, head_dim, n_pad)          # (H,hd,Np)
        kT = qkvT[dim:2 * dim].reshape(num_heads, head_dim, n_pad)
        vT = qkvT[2 * dim:3 * dim].reshape(num_heads, head_dim, n_pad)

        att = lax.dot_general(qT.astype(bf16), kT.astype(bf16),
                              (((1,), (1,)), ((0,), (0,))),
                              preferred_element_type=f32) * scale     # (H,Nq,Nk)
        if n_valid < n_pad:                       # mask padded key columns
            kcol = lax.broadcasted_iota(jnp.int32, att.shape, 2)
            att = jnp.where(kcol < n_valid, att, -1e30)
        att = att - jnp.max(att, axis=-1, keepdims=True)
        p = jnp.exp(att)
        p = p * pl.reciprocal(jnp.sum(p, axis=-1, keepdims=True), approx=True)

        outT = lax.dot_general(vT.astype(bf16), p.astype(bf16),
                               (((2,), (2,)), ((0,), (0,))),
                               preferred_element_type=f32)            # (H,hd,Nq)
        y = lax.dot_general(outT.reshape(dim, n_pad).astype(bf16), wproj_ref[l],
                            (((0,), (0,)), ((), ())),
                            preferred_element_type=f32) + bproj_ref[l]
        x1 = xp + y

        # ---- MLP ----
        x1n = layer_norm(x1, ln2g_ref[l], ln2b_ref[l])
        h1 = jnp.dot(x1n.astype(bf16), w1_ref[l],
                     preferred_element_type=f32) + b1_ref[l]
        h1 = jax.nn.gelu(h1, approximate=True)   # TODO(synk): exact erf in torch
        h2 = jnp.dot(h1.astype(bf16), w2_ref[l],
                     preferred_element_type=f32) + b2_ref[l]
        return x1 + h2

    o_ref[0] = lax.fori_loop(0, depth, layer, x0).astype(o_ref.dtype)


# ----------------------------------------------------------------------------
# Pallas wrappers
# ----------------------------------------------------------------------------
def point_encoder(point_groups, p):
    """point_groups: (BG, N, 3) -> (BG, C)"""
    BG, N, _ = point_groups.shape
    C = p['w4'].shape[-1]
    Np = _round_up(N, 8)
    if Np != N:
        point_groups = jnp.pad(point_groups, ((0, 0), (0, Np - N), (0, 0)))
    # groups per grid step: fill the MXU M dim, but keep >=2 grid steps when
    # possible (v7x has 2 TensorCores).
    GT = max(1, min(BG, 256 // Np, (BG + 1) // 2))
    BGp = _round_up(BG, GT)
    if BGp != BG:
        point_groups = jnp.pad(point_groups, ((0, BGp - BG), (0, 0), (0, 0)))
    names = ('w1', 'b1', 'w2', 'b2', 'w3g', 'w3h', 'b3', 'w4', 'b4')
    ws = [p[k] for k in names]
    kern = partial(encoder_kernel, gt=GT, n_pad=Np, n_valid=N)
    out = pl.pallas_call(
        kern,
        out_shape=jax.ShapeDtypeStruct((BGp, C), jnp.float32),
        grid=(BGp // GT,),
        in_specs=[pl.BlockSpec((GT, Np, 3), lambda g: (g, 0, 0))]
                 + [_rep_spec(w.shape) for w in ws],
        out_specs=pl.BlockSpec((GT, C), lambda g: (g, 0)),
        compiler_params=pltpu.CompilerParams(
            dimension_semantics=("parallel",),
            vmem_limit_bytes=32 * 1024 * 1024),
    )(point_groups, *ws)
    return out[:BG]


def transformer_stack(x, pos, bp, num_heads):
    """x, pos: (B, N, D); applies x = Block(x + pos) for every stacked layer."""
    B, N, D = x.shape
    depth = int(bp['wqkvT'].shape[0])
    head_dim = D // num_heads
    scale = head_dim ** (-0.5)
    Np = _round_up(N, 8)
    if Np != N:
        x = jnp.pad(x, ((0, 0), (0, Np - N), (0, 0)))
        pos = jnp.pad(pos, ((0, 0), (0, Np - N), (0, 0)))
    names = ('ln1_g', 'ln1_b', 'wqkvT', 'wproj', 'bproj',
             'ln2_g', 'ln2_b', 'w1', 'b1', 'w2', 'b2')
    ws = [bp[k] for k in names]
    kern = partial(tblocks_kernel, depth=depth, num_heads=num_heads,
                   head_dim=head_dim, scale=scale, n_valid=N)
    flops = 2 * B * depth * (Np * D * 3 * D + 2 * num_heads * Np * Np * head_dim
                             + Np * D * D + 2 * Np * D * 4 * D)
    transc = B * depth * (num_heads * Np * Np + Np * 4 * D)
    bytes_acc = (3 * 4 * B * Np * D
                 + sum(int(w.size) * w.dtype.itemsize for w in ws))
    out = pl.pallas_call(
        kern,
        out_shape=jax.ShapeDtypeStruct((B, Np, D), jnp.float32),
        grid=(B,),
        in_specs=[pl.BlockSpec((1, Np, D), lambda b: (b, 0, 0)),
                  pl.BlockSpec((1, Np, D), lambda b: (b, 0, 0))]
                 + [_rep_spec(w.shape) for w in ws],
        out_specs=pl.BlockSpec((1, Np, D), lambda b: (b, 0, 0)),
        compiler_params=pltpu.CompilerParams(
            dimension_semantics=("parallel",),
            vmem_limit_bytes=32 * 1024 * 1024),
        cost_estimate=pl.CostEstimate(flops=int(flops),
                                      transcendentals=int(transc),
                                      bytes_accessed=int(bytes_acc)),
    )(x, pos, *ws)
    return out[:, :N, :]


# ----------------------------------------------------------------------------
# Plain-JAX glue
# ----------------------------------------------------------------------------
def layernorm(x, g, b, eps=1e-5):
    mu = jnp.mean(x, axis=-1, keepdims=True)
    var = jnp.mean((x - mu) ** 2, axis=-1, keepdims=True)
    return (x - mu) * lax.rsqrt(var + eps) * g + b


def pos_embed_apply(p, x):
    h = x @ p['w1'] + p['b1']
    h = jax.nn.gelu(h, approximate=True)   # TODO(synk): exact GELU in torch
    return h @ p['w2'] + p['b2']


def chamfer_l1(x, y):
    d = jnp.sqrt(jnp.sum((x[:, :, None, :] - y[:, None, :, :]) ** 2, axis=-1))
    return (jnp.mean(jnp.min(d, axis=2)) + jnp.mean(jnp.min(d, axis=1))) / 2.0


def smooth_l1(a, b):
    d = jnp.abs(a - b)
    return jnp.mean(jnp.where(d < 1.0, 0.5 * d * d, d - 0.5))


# ---- grouping (data-dependent gather; done on host, like misc.fps/knn_point)
def group_divider_np(xyz, num_group, group_size):
    B, P, _ = xyz.shape
    centers = np.zeros((B, num_group, 3), dtype=np.float32)
    for b in range(B):
        dist = np.full(P, np.inf)
        cur = 0
        for i in range(num_group):
            centers[b, i] = xyz[b, cur]
            dist = np.minimum(dist, np.sum((xyz[b] - xyz[b, cur]) ** 2, axis=-1))
            cur = int(np.argmax(dist))
    d = np.sum((centers[:, :, None, :] - xyz[:, None, :, :]) ** 2, axis=-1)
    idx = np.argsort(d, axis=-1)[:, :, :group_size]                   # (B, G, S)
    neigh = np.take_along_axis(xyz[:, None, :, :],
                               idx[..., None], axis=2)                # (B,G,S,3)
    neigh = neigh - centers[:, :, None, :]
    return neigh.astype(np.float32), centers


def make_rand_mask(B, G, ratio, seed=0):
    rng = np.random.default_rng(seed)
    num_mask = int(ratio * G)
    mask = np.zeros((B, G), dtype=bool)
    for i in range(B):
        m = np.hstack([np.zeros(G - num_mask), np.ones(num_mask)])
        rng.shuffle(m)
        mask[i] = m.astype(bool)
    return mask


# ----------------------------------------------------------------------------
# Parameter initialization (deterministic, synthetic, kernel-ready)
# ----------------------------------------------------------------------------
def _n(key, shape, std=0.02):
    return std * jax.random.normal(key, shape, dtype=jnp.float32)


def init_encoder_params(key, C):
    """Kernel-ready Encoder weights: eval-mode BN folded in, bf16 matmul
    weights, second-conv weight split into [global | point] halves."""
    ks = jax.random.split(key, 4)
    bf16 = jnp.bfloat16
    s = jnp.float32(1.0 / np.sqrt(1.0 + 1e-5))   # BN eval: mean 0, var 1
    w1, b1 = _n(ks[0], (3, 128)), jnp.zeros((1, 128), jnp.float32)
    w2, b2 = _n(ks[1], (128, 256)), jnp.zeros((1, 256), jnp.float32)
    w3, b3 = _n(ks[2], (512, 512)), jnp.zeros((1, 512), jnp.float32)
    w4, b4 = _n(ks[3], (512, C)), jnp.zeros((1, C), jnp.float32)
    w1f, b1f = w1 * s, b1 * s                    # fold BN1 into conv1
    w3f, b3f = w3 * s, b3 * s                    # fold BN2 into conv3
    return dict(w1=w1f.astype(bf16), b1=b1f,
                w2=w2.astype(bf16), b2=b2,
                w3g=w3f[:256].astype(bf16), w3h=w3f[256:].astype(bf16), b3=b3f,
                w4=w4.astype(bf16), b4=b4)


def init_block_params(key, D):
    ks = jax.random.split(key, 4)
    H = 4 * D
    return dict(
        ln1_g=jnp.ones((1, D)), ln1_b=jnp.zeros((1, D)),
        wqkv=_n(ks[0], (D, 3 * D)),
        wproj=_n(ks[1], (D, D)), bproj=jnp.zeros((1, D)),
        ln2_g=jnp.ones((1, D)), ln2_b=jnp.zeros((1, D)),
        w1=_n(ks[2], (D, H)), b1=jnp.zeros((1, H)),
        w2=_n(ks[3], (H, D)), b2=jnp.zeros((1, D)),
    )


def stack_block_params(blocks):
    """Stack per-layer params along a leading depth axis (kernel-ready:
    bf16 matmul weights, qkv stored transposed as (depth, 3D, D))."""
    bf16 = jnp.bfloat16
    st = lambda k: jnp.stack([b[k] for b in blocks])
    return dict(
        ln1_g=st('ln1_g'), ln1_b=st('ln1_b'),
        wqkvT=jnp.stack([b['wqkv'].T for b in blocks]).astype(bf16),
        wproj=st('wproj').astype(bf16), bproj=st('bproj'),
        ln2_g=st('ln2_g'), ln2_b=st('ln2_b'),
        w1=st('w1').astype(bf16), b1=st('b1'),
        w2=st('w2').astype(bf16), b2=st('b2'),
    )


def init_posembed_params(key, D):
    k1, k2 = jax.random.split(key)
    return dict(w1=_n(k1, (3, 128)), b1=jnp.zeros((128,)),
                w2=_n(k2, (128, D)), b2=jnp.zeros((D,)))


def init_all_params(key, cfg):
    keys = iter(jax.random.split(key, 32))
    D = cfg['trans_dim']
    p = {}
    p['mae_encoder'] = dict(
        encoder=init_encoder_params(next(keys), cfg['encoder_dims']),
        pos_embed=init_posembed_params(next(keys), D),
        blocks=stack_block_params(
            [init_block_params(next(keys), D) for _ in range(cfg['depth'])]),
        norm_g=jnp.ones((D,)), norm_b=jnp.zeros((D,)),
        num_heads=cfg['num_heads'],
    )
    p['dis_encoder'] = dict(
        encoder=init_encoder_params(next(keys), cfg['encoder_dims']),
        pos_embed=init_posembed_params(next(keys), D),
        blocks=stack_block_params(
            [init_block_params(next(keys), D) for _ in range(cfg['depth'])]),
        norm_g=jnp.ones((D,)), norm_b=jnp.zeros((D,)),
        num_heads=cfg['num_heads'],
        img_token=jnp.zeros((1, 1, D)), text_token=jnp.zeros((1, 1, D)),
        img_pos=jax.random.normal(next(keys), (1, 1, D), dtype=jnp.float32),
        text_pos=jax.random.normal(next(keys), (1, 1, D), dtype=jnp.float32),
    )
    p['decoder_pos_embed'] = init_posembed_params(next(keys), D)
    p['mae_decoder'] = dict(
        blocks=stack_block_params(
            [init_block_params(next(keys), D)
             for _ in range(cfg['decoder_depth'])]),
        norm_g=jnp.ones((D,)), norm_b=jnp.zeros((D,)),
    )
    p['mask_token'] = _n(next(keys), (1, 1, D))
    p['inc_w'] = _n(next(keys), (D, 3 * cfg['group_size']))
    p['inc_b'] = jnp.zeros((3 * cfg['group_size'],))
    p['img_proj_w'] = 0.02 + 0.01 * jax.random.normal(
        next(keys), (D, cfg['img_dim']), dtype=jnp.float32)
    p['img_proj_b'] = jnp.zeros((cfg['img_dim'],))
    p['text_proj_w'] = 0.02 + 0.01 * jax.random.normal(
        next(keys), (D, cfg['text_dim']), dtype=jnp.float32)
    p['text_proj_b'] = jnp.zeros((cfg['text_dim'],))
    # TODO(synk): stub feature extractors for the undefined ImageEncoder / TextEncoder
    p['img_enc_w'] = _n(next(keys), (3 * 16 * 16, cfg['img_dim']))
    p['text_enc_w'] = _n(next(keys), (16, cfg['text_dim']))
    return p


# ----------------------------------------------------------------------------
# Model forward
# ----------------------------------------------------------------------------
def mask_transformer_fwd(p, neighborhood, center, mask_np):
    B, G, S, _ = neighborhood.shape
    tokens = point_encoder(neighborhood.reshape(B * G, S, 3), p['encoder'])
    tokens = tokens.reshape(B, G, -1)
    vis_idx = [np.nonzero(~mask_np[b])[0] for b in range(B)]
    x_vis = jnp.stack([tokens[b, vis_idx[b]] for b in range(B)])
    masked_center = jnp.stack([center[b, vis_idx[b]] for b in range(B)])
    pos = pos_embed_apply(p['pos_embed'], masked_center)
    x = transformer_stack(x_vis, pos, p['blocks'], p['num_heads'])
    return layernorm(x, p['norm_g'], p['norm_b'])


def dis_transformer_fwd(p, neighborhood, center):
    B, G, S, _ = neighborhood.shape
    tokens = point_encoder(neighborhood.reshape(B * G, S, 3), p['encoder'])
    tokens = tokens.reshape(B, G, -1)
    D = tokens.shape[-1]
    pos = pos_embed_apply(p['pos_embed'], center)
    img_tok = jnp.broadcast_to(p['img_token'], (B, 1, D))
    txt_tok = jnp.broadcast_to(p['text_token'], (B, 1, D))
    img_pos = jnp.broadcast_to(p['img_pos'], (B, 1, D))
    txt_pos = jnp.broadcast_to(p['text_pos'], (B, 1, D))
    x = jnp.concatenate([img_tok, txt_tok, tokens], axis=1)
    pos = jnp.concatenate([img_pos, txt_pos, pos], axis=1)
    x = transformer_stack(x, pos, p['blocks'], p['num_heads'])
    x = layernorm(x, p['norm_g'], p['norm_b'])
    return x[:, 0], x[:, 1]


def mae_decoder_fwd(p, x, pos, return_token_num, num_heads):
    x = transformer_stack(x, pos, p['blocks'], num_heads)
    return layernorm(x[:, -return_token_num:], p['norm_g'], p['norm_b'])


def two_tower_forward(p, cfg, pts, img, text):
    B = pts.shape[0]
    G, S = cfg['num_group'], cfg['group_size']

    neigh_np, center_np = group_divider_np(np.asarray(pts), G, S)
    neighborhood = jnp.asarray(neigh_np)
    center = jnp.asarray(center_np)
    mask_np = make_rand_mask(B, G, cfg['mask_ratio'], seed=0)

    x_vis = mask_transformer_fwd(p['mae_encoder'], neighborhood, center, mask_np)
    img_token, text_token = dis_transformer_fwd(p['dis_encoder'], neighborhood,
                                                center)

    _, _, C = x_vis.shape
    vis_idx = [np.nonzero(~mask_np[b])[0] for b in range(B)]
    msk_idx = [np.nonzero(mask_np[b])[0] for b in range(B)]
    center_vis = jnp.stack([center[b, vis_idx[b]] for b in range(B)])
    center_msk = jnp.stack([center[b, msk_idx[b]] for b in range(B)])
    pos_emd_vis = pos_embed_apply(p['decoder_pos_embed'], center_vis)
    pos_emd_mask = pos_embed_apply(p['decoder_pos_embed'], center_msk)

    N = pos_emd_mask.shape[1]
    mask_tok = jnp.broadcast_to(p['mask_token'], (B, N, C))
    x_full = jnp.concatenate([x_vis, mask_tok], axis=1)
    pos_full = jnp.concatenate([pos_emd_vis, pos_emd_mask], axis=1)

    x_rec = mae_decoder_fwd(p['mae_decoder'], x_full, pos_full, N,
                            cfg['decoder_num_heads'])
    Bm, M, _ = x_rec.shape
    rebuild = (x_rec @ p['inc_w'] + p['inc_b']).reshape(Bm * M, -1, 3)
    gt = jnp.stack([neighborhood[b, msk_idx[b]]
                    for b in range(B)]).reshape(Bm * M, -1, 3)
    loss1 = chamfer_l1(rebuild, gt)

    img_feature = img.reshape(B, -1) @ p['img_enc_w']
    text_feature = text @ p['text_enc_w']
    img_token = img_token @ p['img_proj_w'] + p['img_proj_b']
    text_token = text_token @ p['text_proj_w'] + p['text_proj_b']
    loss2 = smooth_l1(img_feature, img_token)
    loss3 = smooth_l1(text_feature, text_token)
    return loss1 + loss2 + loss3


# ----------------------------------------------------------------------------
if __name__ == "__main__":
    # trans_dim chosen as a full 128-lane vreg per the perf review.
    cfg = dict(trans_dim=128, encoder_dims=128, depth=2, num_heads=4,
               decoder_depth=2, decoder_num_heads=4, mask_ratio=0.5,
               num_group=8, group_size=8, img_dim=32, text_dim=32)

    key = jax.random.PRNGKey(0)
    k_par, k_pts, k_img, k_txt = jax.random.split(key, 4)
    params = init_all_params(k_par, cfg)

    pts = jax.random.normal(k_pts, (2, 64, 3), dtype=jnp.float32)
    img = jax.random.normal(k_img, (2, 3, 16, 16), dtype=jnp.float32)
    text = jax.random.normal(k_txt, (2, 16), dtype=jnp.float32)

    loss = two_tower_forward(params, cfg, pts, img, text)
    jax.block_until_ready(loss)
    assert jnp.isfinite(loss)
    print("KERNEL_OK")
</pallas_src>

<mosaic_0001>
module attributes {stable_mosaic.version = 11 : i64} {
  func.func @encoder_kernel(%arg0: i32, %arg1: memref<8x8x3xf32, #tpu.memory_space<vmem>>, %arg2: memref<3x128xbf16, #tpu.memory_space<vmem>>, %arg3: memref<1x128xf32, #tpu.memory_space<vmem>>, %arg4: memref<128x256xbf16, #tpu.memory_space<vmem>>, %arg5: memref<1x256xf32, #tpu.memory_space<vmem>>, %arg6: memref<256x512xbf16, #tpu.memory_space<vmem>>, %arg7: memref<256x512xbf16, #tpu.memory_space<vmem>>, %arg8: memref<1x512xf32, #tpu.memory_space<vmem>>, %arg9: memref<512x128xbf16, #tpu.memory_space<vmem>>, %arg10: memref<1x128xf32, #tpu.memory_space<vmem>>, %arg11: memref<8x128xf32, #tpu.memory_space<vmem>>) attributes {dimension_semantics = [#tpu.dimension_semantics<parallel>], iteration_bounds = array<i64: 2>, scalar_prefetch = 0 : i64, scratch_operands = 0 : i64, tpu.core_type = #tpu.core_type<tc>, window_params = [{transform_indices = @transform_0, window_bounds = array<i64: 8, 8, 3>}, {pipeline_mode = #tpu.pipeline_mode<synchronous>, transform_indices = @transform_1, window_bounds = array<i64: 3, 128>}, {pipeline_mode = #tpu.pipeline_mode<synchronous>, transform_indices = @transform_2, window_bounds = array<i64: 1, 128>}, {pipeline_mode = #tpu.pipeline_mode<synchronous>, transform_indices = @transform_3, window_bounds = array<i64: 128, 256>}, {pipeline_mode = #tpu.pipeline_mode<synchronous>, transform_indices = @transform_4, window_bounds = array<i64: 1, 256>}, {pipeline_mode = #tpu.pipeline_mode<synchronous>, transform_indices = @transform_5, window_bounds = array<i64: 256, 512>}, {pipeline_mode = #tpu.pipeline_mode<synchronous>, transform_indices = @transform_6, window_bounds = array<i64: 256, 512>}, {pipeline_mode = #tpu.pipeline_mode<synchronous>, transform_indices = @transform_7, window_bounds = array<i64: 1, 512>}, {pipeline_mode = #tpu.pipeline_mode<synchronous>, transform_indices = @transform_8, window_bounds = array<i64: 512, 128>}, {pipeline_mode = #tpu.pipeline_mode<synchronous>, transform_indices = @transform_9, window_bounds = array<i64: 1, 128>}, {transform_indices = @transform_10, window_bounds = array<i64: 8, 128>}]} {
    %c0 = arith.constant 0 : index
    %c0_0 = arith.constant 0 : index
    %c0_1 = arith.constant 0 : index
    %0 = vector.load %arg1[%c0, %c0_0, %c0_1] : memref<8x8x3xf32, #tpu.memory_space<vmem>>, vector<8x8x3xf32>
    %1 = vector.shape_cast %0 : vector<8x8x3xf32> to vector<64x3xf32>
    %2 = arith.truncf %1 : vector<64x3xf32> to vector<64x3xbf16>
    %c0_2 = arith.constant 0 : index
    %c0_3 = arith.constant 0 : index
    %3 = vector.load %arg2[%c0_2, %c0_3] : memref<3x128xbf16, #tpu.memory_space<vmem>>, vector<3x128xbf16>
    %cst = arith.constant dense<0.000000e+00> : vector<64x128xf32>
    %4 = tpu.matmul %2, %3, %cst {dimension_numbers = #tpu.dot_dimension_numbers<[1], [0], [0], [1], [0, 0, 1, 1], [], []>} : vector<64x3xbf16>, vector<3x128xbf16>, vector<64x128xf32> -> vector<64x128xf32>
    %c0_4 = arith.constant 0 : index
    %c0_5 = arith.constant 0 : index
    %5 = vector.load %arg3[%c0_4, %c0_5] : memref<1x128xf32, #tpu.memory_space<vmem>>, vector<1x128xf32>
    %6 = vector.broadcast %5 : vector<1x128xf32> to vector<64x128xf32>
    %7 = arith.addf %4, %6 : vector<64x128xf32>
    %cst_6 = arith.constant 0.000000e+00 : f32
    %8 = vector.broadcast %cst_6 : f32 to vector<64x128xf32>
    %9 = arith.maximumf %7, %8 : vector<64x128xf32>
    %10 = arith.truncf %9 : vector<64x128xf32> to vector<64x128xbf16>
    %c0_7 = arith.constant 0 : index
    %c0_8 = arith.constant 0 : index
    %11 = vector.load %arg4[%c0_7, %c0_8] : memref<128x256xbf16, #tpu.memory_space<vmem>>, vector<128x256xbf16>
    %cst_9 = arith.constant dense<0.000000e+00> : vector<64x256xf32>
    %12 = tpu.matmul %10, %11, %cst_9 {dimension_numbers = #tpu.dot_dimension_numbers<[1], [0], [0], [1], [0, 0, 1, 1], [], []>} : vector<64x128xbf16>, vector<128x256xbf16>, vector<64x256xf32> -> vector<64x256xf32>
    %c0_10 = arith.constant 0 : index
    %c0_11 = arith.constant 0 : index
    %13 = vector.load %arg5[%c0_10, %c0_11] : memref<1x256xf32, #tpu.memory_space<vmem>>, vector<1x256xf32>
    %14 = vector.broadcast %13 : vector<1x256xf32> to vector<64x256xf32>
    %15 = arith.addf %12, %14 : vector<64x256xf32>
    %16 = vector.shape_cast %15 : vector<64x256xf32> to vector<8x8x256xf32>
    %cst_12 = arith.constant dense<0xFF800000> : vector<8x256xf32>
    %17 = vector.multi_reduction <maximumf>, %16, %cst_12 [1] : vector<8x8x256xf32> to vector<8x256xf32>
    %18 = arith.truncf %15 : vector<64x256xf32> to vector<64x256xbf16>
    %c0_13 = arith.constant 0 : index
    %c0_14 = arith.constant 0 : index
    %19 = vector.load %arg7[%c0_13, %c0_14] : memref<256x512xbf16, #tpu.memory_space<vmem>>, vector<256x512xbf16>
    %cst_15 = arith.constant dense<0.000000e+00> : vector<64x512xf32>
    %20 = tpu.matmul %18, %19, %cst_15 {dimension_numbers = #tpu.dot_dimension_numbers<[1], [0], [0], [1], [0, 0, 1, 1], [], []>} : vector<64x256xbf16>, vector<256x512xbf16>, vector<64x512xf32> -> vector<64x512xf32>
    %21 = arith.truncf %17 : vector<8x256xf32> to vector<8x256xbf16>
    %c0_16 = arith.constant 0 : index
    %c0_17 = arith.constant 0 : index
    %22 = vector.load %arg6[%c0_16, %c0_17] : memref<256x512xbf16, #tpu.memory_space<vmem>>, vector<256x512xbf16>
    %cst_18 = arith.constant dense<0.000000e+00> : vector<8x512xf32>
    %23 = tpu.matmul %21, %22, %cst_18 {dimension_numbers = #tpu.dot_dimension_numbers<[1], [0], [0], [1], [0, 0, 1, 1], [], []>} : vector<8x256xbf16>, vector<256x512xbf16>, vector<8x512xf32> -> vector<8x512xf32>
    %24 = vector.shape_cast %20 : vector<64x512xf32> to vector<8x8x512xf32>
    %25 = vector.shape_cast %23 : vector<8x512xf32> to vector<8x1x512xf32>
    %26 = vector.broadcast %25 : vector<8x1x512xf32> to vector<8x8x512xf32>
    %27 = arith.addf %24, %26 : vector<8x8x512xf32>
    %c0_19 = arith.constant 0 : index
    %c0_20 = arith.constant 0 : index
    %28 = vector.load %arg8[%c0_19, %c0_20] : memref<1x512xf32, #tpu.memory_space<vmem>>, vector<1x512xf32>
    %29 = vector.shape_cast %28 : vector<1x512xf32> to vector<1x1x512xf32>
    %30 = vector.broadcast %29 : vector<1x1x512xf32> to vector<8x8x512xf32>
    %31 = arith.addf %27, %30 : vector<8x8x512xf32>
    %cst_21 = arith.constant 0.000000e+00 : f32
    %32 = vector.broadcast %cst_21 : f32 to vector<8x8x512xf32>
    %33 = arith.maximumf %31, %32 : vector<8x8x512xf32>
    %34 = vector.shape_cast %33 : vector<8x8x512xf32> to vector<64x512xf32>
    %35 = arith.truncf %34 : vector<64x512xf32> to vector<64x512xbf16>
    %c0_22 = arith.constant 0 : index
    %c0_23 = arith.constant 0 : index
    %36 = vector.load %arg9[%c0_22, %c0_23] : memref<512x128xbf16, #tpu.memory_space<vmem>>, vector<512x128xbf16>
    %cst_24 = arith.constant dense<0.000000e+00> : vector<64x128xf32>
    %37 = tpu.matmul %35, %36, %cst_24 {dimension_numbers = #tpu.dot_dimension_numbers<[1], [0], [0], [1], [0, 0, 1, 1], [], []>} : vector<64x512xbf16>, vector<512x128xbf16>, vector<64x128xf32> -> vector<64x128xf32>
    %c0_25 = arith.constant 0 : index
    %c0_26 = arith.constant 0 : index
    %38 = vector.load %arg10[%c0_25, %c0_26] : memref<1x128xf32, #tpu.memory_space<vmem>>, vector<1x128xf32>
    %39 = vector.broadcast %38 : vector<1x128xf32> to vector<64x128xf32>
    %40 = arith.addf %37, %39 : vector<64x128xf32>
    %41 = vector.shape_cast %40 : vector<64x128xf32> to vector<8x8x128xf32>
    %cst_27 = arith.constant dense<0xFF800000> : vector<8x128xf32>
    %42 = vector.multi_reduction <maximumf>, %41, %cst_27 [1] : vector<8x8x128xf32> to vector<8x128xf32>
    %c0_28 = arith.constant 0 : index
    %c0_29 = arith.constant 0 : index
    %43 = vector.load %arg11[%c0_28, %c0_29] : memref<8x128xf32, #tpu.memory_space<vmem>>, vector<8x128xf32>
    tpu.vector_store %arg11[%c0_28, %c0_29], %42 {strides = array<i32>} : memref<8x128xf32, #tpu.memory_space<vmem>>, vector<8x128xf32>,
    return
  }
  func.func @transform_0(%arg0: i32) -> (i32, i32, i32) {
    %c0_i32 = arith.constant 0 : i32
    %c0_i32_0 = arith.constant 0 : i32
    %c0_i32_1 = arith.constant 0 : i32
    return %arg0, %c0_i32, %c0_i32_0 : i32, i32, i32
  }
  func.func @transform_1(%arg0: i32) -> (i32, i32) {
    %c0_i32 = arith.constant 0 : i32
    %c0_i32_0 = arith.constant 0 : i32
    %c0_i32_1 = arith.constant 0 : i32
    return %c0_i32, %c0_i32_0 : i32, i32
  }
  func.func @transform_2(%arg0: i32) -> (i32, i32) {
    %c0_i32 = arith.constant 0 : i32
    %c0_i32_0 = arith.constant 0 : i32
    %c0_i32_1 = arith.constant 0 : i32
    return %c0_i32, %c0_i32_0 : i32, i32
  }
  func.func @transform_3(%arg0: i32) -> (i32, i32) {
    %c0_i32 = arith.constant 0 : i32
    %c0_i32_0 = arith.constant 0 : i32
    %c0_i32_1 = arith.constant 0 : i32
    return %c0_i32, %c0_i32_0 : i32, i32
  }
  func.func @transform_4(%arg0: i32) -> (i32, i32) {
    %c0_i32 = arith.constant 0 : i32
    %c0_i32_0 = arith.constant 0 : i32
    %c0_i32_1 = arith.constant 0 : i32
    return %c0_i32, %c0_i32_0 : i32, i32
  }
  func.func @transform_5(%arg0: i32) -> (i32, i32) {
    %c0_i32 = arith.constant 0 : i32
    %c0_i32_0 = arith.constant 0 : i32
    %c0_i32_1 = arith.constant 0 : i32
    return %c0_i32, %c0_i32_0 : i32, i32
  }
  func.func @transform_6(%arg0: i32) -> (i32, i32) {
    %c0_i32 = arith.constant 0 : i32
    %c0_i32_0 = arith.constant 0 : i32
    %c0_i32_1 = arith.constant 0 : i32
    return %c0_i32, %c0_i32_0 : i32, i32
  }
  func.func @transform_7(%arg0: i32) -> (i32, i32) {
    %c0_i32 = arith.constant 0 : i32
    %c0_i32_0 = arith.constant 0 : i32
    %c0_i32_1 = arith.constant 0 : i32
    return %c0_i32, %c0_i32_0 : i32, i32
  }
  func.func @transform_8(%arg0: i32) -> (i32, i32) {
    %c0_i32 = arith.constant 0 : i32
    %c0_i32_0 = arith.constant 0 : i32
    %c0_i32_1 = arith.constant 0 : i32
    return %c0_i32, %c0_i32_0 : i32, i32
  }
  func.func @transform_9(%arg0: i32) -> (i32, i32) {
    %c0_i32 = arith.constant 0 : i32
    %c0_i32_0 = arith.constant 0 : i32
    %c0_i32_1 = arith.constant 0 : i32
    return %c0_i32, %c0_i32_0 : i32, i32
  }
  func.func @transform_10(%arg0: i32) -> (i32, i32) {
    %c0_i32 = arith.constant 0 : i32
    %c0_i32_0 = arith.constant 0 : i32
    return %arg0, %c0_i32 : i32, i32
  }
}

</mosaic_0001>

<bundles_post_ra>
// kernel: tpu_custom_call.1
= control target key start
LH: loop header
LB: loop body
LE: loop exit
PB: predicated region body
PF: predicated region fallthrough
CT: control target
= control target key end

     0   :  { %15 = vsyncpa [#allocation3], 0  ;;  %s4253_s0 = inlined_call_operand.vmem [shape: f32[16,8,3], index: 0, kind: input, shape index: {}]   ;;  %s4254_s1 = inlined_call_operand.vmem [shape: bf16[3,128], index: 1, kind: input, shape index: {}]   ;;  %s4255_s2 = inlined_call_operand.vmem [shape: f32[1,128], index: 2, kind: input, shape index: {}]   ;;  %s4256_s3 = inlined_call_operand.vmem [shape: bf16[128,256], index: 3, kind: input, shape index: {}]   ;;  %s4257_s4 = inlined_call_operand.vmem [shape: f32[1,256], index: 4, kind: input, shape index: {}]   ;;  %s4258_s5 = inlined_call_operand.hbm [shape: bf16[256,512], index: 5, kind: input, shape index: {}]   ;;  %s4259_s6 = inlined_call_operand.hbm [shape: bf16[256,512], index: 6, kind: input, shape index: {}]   ;;  %s4260_s7 = inlined_call_operand.vmem [shape: f32[1,512], index: 7, kind: input, shape index: {}]   ;;  %s4261_s8 = inlined_call_operand.hbm [shape: bf16[512,128], index: 8, kind: input, shape index: {}]   ;;  %s4262_s9 = inlined_call_operand.vmem [shape: f32[1,128], index: 9, kind: input, shape index: {}]   ;;  %s4263_s10 = inlined_call_operand.hbm [shape: f32[16,128], index: 10, kind: output, shape index: {}]  }
   0x1   :  { %16 = vsyncpa [#allocation6], 0 }
   0x2   :  { %17 = vsyncpa [#allocation4], 0 }
   0x3   :  { %19 = vsyncpa [#allocation4 + $0x1], 0  ;;  %s3653_s13 = smov 0   ;;  %s3655_s14 = smov 0  }
   0x4   :  { %s3657_s15 = smov 0   ;;  %s3659_s16 = smov 0  }
   0x5 LB: > { %s3674_s17 = sadd.s32 4294967295, %s3585_s16   ;;  %s2804_s18 = sadd.s32 4294967294, %s3585_s16   ;;  %s3585_s16 = sphi %s3659_s16, %s4324_s16   ;;  %s3581_s15 = sphi %s3657_s15, %s4323_s15   ;;  %s3577_s14 = sphi %s3655_s14, %s4322_s14   ;;  %s3573_s13 = sphi %s3653_s13, %s4321_s13  }
   0x6   : > { %s3678_s19 = sadd.s32 1, %s3585_s16   ;;  %s247_s20 = sadd.s32 1, %s3581_s15 }
   0x7   : > { %s244_s21 = ssub.s32 %s3585_s16, %s3678_s19  ;;  %p257_p0 = scmp.ne.s32.totalorder %s3581_s15, %s3577_s14 }
   0x8   : > { %p245_p1 = scmp.eq.s32.totalorder %s244_s21, 0  ;;  %p258_p2 = scmp.eq.s32.totalorder %s3674_s17, 1 }
   0x9   : > { %p263_p3 = scmp.ne.s32.totalorder %s3577_s14, %s3573_s13  ;;  %p264_p4 = scmp.eq.s32.totalorder %s2804_s18, 1 }
   0xa   : > { %s3689_s22 = scalar_select %p245_p1, %s3581_s15, %s247_s20  }
   0xb   : > { %p3691_p5 = por %p258_p2, %p257_p0  ;;  %p3695_p6 = por %p264_p4, %p263_p3 }
   0xc   : > { %4277 = sst [smem:[#allocation12_spill]] %s3689_s22  ;;  %p2805_p7 = scmp.ge.s32.totalorder %s3585_s16, 1 }
   0xd   : > { %s4278_s23 = scalar_select %p3691_p5, 1, 0 }
   0xe   : > { %s4279_s24 = scalar_select %p3695_p6, 1, 0 }
   0xf   : > { %p271_p8 = scmp.lt.s32.totalorder %s3585_s16, 3  ;;  %p4264_p9 = scmp.eq.s32.totalorder %s3674_s17, 0 }
  0x10   : > { %s3587_s26 = smov [#allocation5]   ;;  %s3588_s29 = smov [#allocation2]  }
  0x11   : > { %p3702_p10 = pnand %p2805_p7, %p271_p8  ;;  %s308_s27 = sshll.u32 %s3587_s26, 4  ;;  %s309_s27 = int_to_ptr.vmem [resolvable:$true] %s308_s27 }
  0x12   : > { %s295_s30 = sshll.u32 %s3588_s29, 4  ;;  %s3589_s11 = smov [#allocation7]   ;;  %s296_s30 = int_to_ptr.vmem [resolvable:$true] %s295_s30 }
  0x13   : > { %p3128_p11 = pneg %p3702_p10  ;;  %s324_s12 = sshll.u32 %s3589_s11, 4  ;;  %s325_s12 = int_to_ptr.vmem [resolvable:$true] %s324_s12 }
  0x14   : > { %s3450_s18 = scalar_lea.vmem %s309_s27, 8192  ;;  %p3458_p3 = scmp.lt.s32.totalorder %s309_s27, %s309_s27 }
  0x15   : > { %p3710_p12 = pnand %p4264_p9, %p3128_p11  ;;  %p3451_p0 = scmp.ne.s32.totalorder %s309_s27, %s3450_s18 }
  0x16   : > { %p3459_p4 = scmp.lt.s32.totalorder %s3450_s18, %s3450_s18 }
  0x17   : > { %p3441_p13 = pneg %p3710_p12 }
  0x18   : > { %p3460_p7 = por %p3459_p4, %p3458_p3 }
  0x19   : > { %p3453_p1 = pnand %p3451_p0, %p3441_p13 }
  0x1b   : > { %p3454_p2 = pneg %p3453_p1 }
  0x1d   : > { %p3461_p8 = pnand %p3460_p7, %p3454_p2 }
  0x1f   : > { %3464 = shalt.err (!%p3461_p8)
}
  0x20   : > { %s3590_s20 = smov 256   ;;  %s3591_s21 = smov 16  }
  0x21   : > { %3134 = dma.hbm_to_vmem [thread:$0]  (!%p3710_p12), %s4259_s6, 8192, %s309_s27, [#allocation6], %s3590_s20, %s3590_s20, %s3591_s21  }
  0x22   : > { %s3476_s11 = scalar_lea.vmem %s296_s30, 8192  ;;  %p3484_p9 = scmp.lt.s32.totalorder %s296_s30, %s296_s30 }
  0x23   : > { %p3477_p11 = scmp.ne.s32.totalorder %s296_s30, %s3476_s11  ;;  %p3485_p6 = scmp.lt.s32.totalorder %s3476_s11, %s3476_s11 }
  0x25   : > { %p3479_p0 = pnand %p3477_p11, %p3441_p13  ;;  %p3486_p3 = por %p3485_p6, %p3484_p9 }
  0x27   : > { %p3480_p1 = pneg %p3479_p0 }
  0x29   : > { %p3487_p2 = pnand %p3486_p3, %p3480_p1 }
  0x2b   : > { %3490 = shalt.err (!%p3487_p2)
}
  0x2c   : > { %3131 = dma.hbm_to_vmem [thread:$0]  (!%p3710_p12), %s4258_s5, 8192, %s296_s30, [#allocation3], %s3590_s20, %s3590_s20, %s3591_s21  }
  0x2d   : > { %s3502_s27 = scalar_lea.vmem %s325_s12, 4096  ;;  %p3510_p11 = scmp.lt.s32.totalorder %s325_s12, %s325_s12 }
  0x2e   : > { %p3503_p4 = scmp.ne.s32.totalorder %s325_s12, %s3502_s27  ;;  %p3511_p0 = scmp.lt.s32.totalorder %s3502_s27, %s3502_s27 }
  0x30   : > { %p3505_p7 = pnand %p3503_p4, %p3441_p13  ;;  %p3512_p5 = por %p3511_p0, %p3510_p11 }
  0x32   : > { %p3506_p8 = pneg %p3505_p7 }
  0x34   : > { %p3513_p6 = pnand %p3512_p5, %p3506_p8 }
  0x36   : > { %3516 = shalt.err (!%p3513_p6)
}
  0x37   : > { %s3592_s26 = smov 64   ;;  %s3593_s29 = smov 4  }
  0x38   : > { %3137 = dma.hbm_to_vmem [thread:$0]  (!%p3710_p12), %s4261_s8, 4096, %s325_s12, [#allocation6], %s3592_s26, %s3592_s26, %s3593_s29  }
  0x39   : > { %352 = sbr.rel (%p3702_p10) target bundleno = 1036 (0x40c), region = 60 }
  0x3e   : > { %p4282_p9 = scmp.eq.s32.totalorder %s3674_s17, 0 }
  0x40   : > { %3560 = dma.done.wait (%p4282_p9), [#allocation3], 8192   ;;  %p4283_p13 = pmov %p4282_p9 }
  0x41   : > { %p4284_p5 = pmov %p4282_p9 }
  0x42   : > { %3562 = vsyncadd (%p4283_p13), [#allocation3], 4294959104 }
  0x43   : > { %3564 = dma.done.wait (%p4284_p5), [#allocation6], 12288   ;;  %p4285_p1 = pmov %p4284_p5 }
  0x44   : > { %vm438_vm0 = vcmask 1040384   ;;  %s2815_s28 = sshll.u32 %s3674_s17, 3  ;;  %vm439_vm1 = vcmask 1041408   ;;  %v3594_v0 = vmov 65535   ;;  %v417_v3 = vld [vmem:[%s4254_s1] sm:$0x3] }
  0x45   : > { %3566 = vsyncadd (%p4285_p1), [#allocation6], 4294955008  ;;  %p399_p3 = scmp.lt.s32.totalorder %s2815_s28, 15  ;;  %v440_v1 = vsel %vm438_vm0, 4294967295, %v3594_v0  ;;  %vm425_vm2 = vcmask 23552   ;;  %v3595_v33 = vmov 0  }
  0x46   : > { %v441_v2 = vsel %vm439_vm1, %v440_v1, 0  ;;  %v3191_v13 = vld [vmem:[%s4256_s3 + $0x74] ss:$8 sps:$4 sm:$0xff]   ;;  %v3193_v15 = vld [vmem:[%s4256_s3 + $0x70] ss:$8 sps:$4 sm:$0xff]   ;;  %662 = vmatprep.mubr.bf16.mxu1 %v3595_v33  ;;  %vm1449_vm3 = vcmask 1041409  }
  0x47   : > { %s4326_s28 = smov (!%p399_p3, %s2815_s28), 15  ;;  %v443_v6 = vand.u32 %v441_v2, %v417_v3  ;;  %630 = vmatprep.subr.bf16.mxu1 %v3191_v13  ;;  %v3194_v16 = vld [vmem:[%s4256_s3 + $0x64] ss:$8 sps:$4 sm:$0xff]   ;;  %v3196_v18 = vld [vmem:[%s4256_s3 + $0x60] ss:$8 sps:$4 sm:$0xff]   ;;  %vm1451_vm4 = vcmask 1042434  }
  0x48   : > { %s2816_s25 = sshll.u32 %s4326_s28, 3  ;;  %631 = vmatpush1.bf16.msra.mxu1 %v3193_v15  ;;  %v3197_v19 = vld [vmem:[%s4256_s3 + $0x54] ss:$8 sps:$4 sm:$0xff]   ;;  %v3199_v21 = vld [vmem:[%s4256_s3 + $0x50] ss:$8 sps:$4 sm:$0xff]   ;;  %vm1453_vm5 = vcmask 1043459  }
  0x49   : > { %s402_s20 = scalar_lea.vmem %s4253_s0, %s2816_s25  ;;  %3088 = vmatprep.subr.bf16.mxu0 %v443_v6  ;;  %632 = vmatprep.subr.bf16.mxu1 %v3194_v16  ;;  %v3200_v22 = vld [vmem:[%s4256_s3 + $0x44] ss:$8 sps:$4 sm:$0xff]   ;;  %v3202_v24 = vld [vmem:[%s4256_s3 + $0x40] ss:$8 sps:$4 sm:$0xff]   ;;  %v3203_v25 = vld [vmem:[%s4256_s3 + $0x34] ss:$8 sps:$4 sm:$0xff]  }
  0x4a   : > { %v405_v4 = vld [vmem:[%s402_s20] sm:$0xff]  ;;  %v406_v5 = vld [vmem:[%s402_s20 + $0x8] sm:$0xff]  ;;  %v407_v8 = vld [vmem:[%s402_s20 + $0x10] sm:$0xff]  ;;  %3089 = vmatpush3.bf16.msra.mxu0 %v443_v6  ;;  %vm1455_vm6 = vcmask 1044484   ;;  %vm1457_vm7 = vcmask 1045509   ;;  %vm1459_vm8 = vcmask 1046534  }
  0x4b   : > { %v413_v7 = vpack.c.bf16 %v406_v5, %v405_v4  ;;  %v408_v9 = vld [vmem:[%s402_s20 + $0x18] sm:$0xff]  ;;  %v409_v10 = vld [vmem:[%s402_s20 + $0x20] sm:$0xff]  ;;  %v410_v11 = vld [vmem:[%s402_s20 + $0x28] sm:$0xff]  ;;  %vm1461_vm9 = vcmask 1047559   ;;  %s395_s28 = sand.u32 1, %s3577_s14   ;;  %p4318_p12 = scmp.ne.s32.totalorder %s4278_s23, 0 }
  0x4c   : > { %v414_v12 = vpack.c.bf16 %v408_v9, %v407_v8  ;;  %v415_v14 = vpack.c.bf16 %v410_v11, %v409_v10  ;;  %v411_v17 = vld [vmem:[%s402_s20 + $0x30] sm:$0xff]  ;;  %v412_v20 = vld [vmem:[%s402_s20 + $0x38] sm:$0xff]  ;;  %633 = vmatpush1.bf16.msra.mxu1 %v3196_v18  ;;  %v3206_v27 = vld [vmem:[%s4256_s3 + $0x24] ss:$8 sps:$4 sm:$0xff]   ;;  %s2814_s25 = sshll.u32 %s395_s28, 3  ;;  %s3000_s20 = sshll.u32 %s3674_s17, 7 }
  0x4d   : > { %3090 = vmatprep.mubr.msk.bf16.mxu0 %vm425_vm2, %v413_v7  ;;  %v416_v23 = vpack.c.bf16 %v412_v20, %v411_v17  ;;  %634 = vmatprep.subr.bf16.mxu1 %v3197_v19  ;;  %v3205_v26 = vld [vmem:[%s4256_s3 + $0x30] ss:$8 sps:$4 sm:$0xff]   ;;  %v3208_v28 = vld [vmem:[%s4256_s3 + $0x20] ss:$8 sps:$4 sm:$0xff]   ;;  %v3209_v29 = vld [vmem:[%s4256_s3 + $0x14] ss:$8 sps:$4 sm:$0xff]   ;;  %s4215_s27 = scalar_lea.hbm %s4263_s10, %s3000_s20 }
  0x4e   : > { %3091 = vmatmul.mubr.msk.bf16.vlgmr.msra.gmra.mxu0 %vm425_vm2, %v414_v12  ;;  %v3211_v30 = vld [vmem:[%s4256_s3 + $0x10] ss:$8 sps:$4 sm:$0xff]   ;;  %v3212_v31 = vld [vmem:[%s4256_s3 + $0x4] ss:$8 sps:$4 sm:$0xff]   ;;  %v3214_v32 = vld [vmem:[%s4256_s3] ss:$8 sps:$4 sm:$0xff]  }
  0x4f   : > { %3094 = vmatprep.mubr.msk.bf16.mxu0 %vm425_vm2, %v415_v14  ;;  %v3215_v34 = vld [vmem:[#allocation5 + $0xe0] ss:$16 sps:$4 sm:$0xff]   ;;  %v3217_v35 = vld [vmem:[#allocation5 + $0xe4] ss:$16 sps:$4 sm:$0xff]   ;;  %v3220_v36 = vld [vmem:[#allocation5 + $0xec] ss:$16 sps:$4 sm:$0xff]  }
  0x50   : > { %635 = vmatpush1.bf16.msra.mxu1 %v3199_v21  ;;  %v3223_v37 = vld [vmem:[#allocation5 + $0xc4] ss:$16 sps:$4 sm:$0xff]   ;;  %1191 = vmatprep.subr.bf16.mxu0 %v3217_v35  ;;  %v3221_v38 = vld [vmem:[#allocation5 + $0xc0] ss:$16 sps:$4 sm:$0xff]   ;;  %v3218_v10 = vld [vmem:[#allocation5 + $0xe8] ss:$16 sps:$4 sm:$0xff]  }
  0x51   : > { %636 = vmatprep.subr.bf16.mxu1 %v3200_v22  ;;  %1192 = vmatpush1.bf16.msra.mxu0 %v3215_v34  ;;  %v3229_v39 = vld [vmem:[#allocation5 + $0xa4] ss:$16 sps:$4 sm:$0xff]   ;;  %v3227_v40 = vld [vmem:[#allocation5 + $0xa0] ss:$16 sps:$4 sm:$0xff]   ;;  %v3226_v13 = vld [vmem:[#allocation5 + $0xcc] ss:$16 sps:$4 sm:$0xff]  }
  0x52   : > { %1193 = vmatprep.subr.bf16.mxu0 %v3223_v37  ;;  %v3235_v41 = vld [vmem:[#allocation5 + $0x84] ss:$16 sps:$4 sm:$0xff]   ;;  %v3233_v42 = vld [vmem:[#allocation5 + $0x80] ss:$16 sps:$4 sm:$0xff]   ;;  %v3224_v17 = vld [vmem:[#allocation5 + $0xc8] ss:$16 sps:$4 sm:$0xff]  }
  0x53   : > { %v3241_v43 = vld [vmem:[#allocation5 + $0x64] ss:$16 sps:$4 sm:$0xff]   ;;  %v3239_v44 = vld [vmem:[#allocation5 + $0x60] ss:$16 sps:$4 sm:$0xff]   ;;  %v3232_v19 = vld [vmem:[#allocation5 + $0xac] ss:$16 sps:$4 sm:$0xff]  }
  0x54   : > { %637 = vmatpush1.bf16.msra.mxu1 %v3202_v24  ;;  %v3247_v45 = vld [vmem:[#allocation5 + $0x44] ss:$16 sps:$4 sm:$0xff]   ;;  %v3245_v46 = vld [vmem:[#allocation5 + $0x40] ss:$16 sps:$4 sm:$0xff]   ;;  %v3242_v34 = vld [vmem:[#allocation5 + $0x68] ss:$16 sps:$4 sm:$0xff]  }
  0x55   : > { %638 = vmatprep.subr.bf16.mxu1 %v3203_v25  ;;  %1194 = vmatpush1.bf16.msra.mxu0 %v3221_v38  ;;  %v3253_v47 = vld [vmem:[#allocation5 + $0x24] ss:$16 sps:$4 sm:$0xff]   ;;  %v3251_v48 = vld [vmem:[#allocation5 + $0x20] ss:$16 sps:$4 sm:$0xff]   ;;  %v3238_v25 = vld [vmem:[#allocation5 + $0x8c] ss:$16 sps:$4 sm:$0xff]  }
  0x56   : > { %3095 = vmatmul.mubr.msk.bf16.gmra.mxu0 %vm425_vm2, %v416_v23  ;;  %1195 = vmatprep.subr.bf16.mxu0 %v3229_v39  ;;  %v3259_v49 = vld [vmem:[#allocation5 + $0x4] ss:$16 sps:$4 sm:$0xff]   ;;  %v3257_v50 = vld [vmem:[#allocation5] ss:$16 sps:$4 sm:$0xff]   ;;  %v3230_v23 = vld [vmem:[#allocation5 + $0xa8] ss:$16 sps:$4 sm:$0xff]  }
  0x57   : > { %v3265_v51 = vld [vmem:[#allocation5 + $0x1e4] ss:$16 sps:$4 sm:$0xff]   ;;  %v3263_v52 = vld [vmem:[#allocation5 + $0x1e0] ss:$16 sps:$4 sm:$0xff]   ;;  %v3250_v35 = vld [vmem:[#allocation5 + $0x4c] ss:$16 sps:$4 sm:$0xff]  }
  0x58   : > { %639 = vmatpush1.bf16.msra.mxu1 %v3205_v26  ;;  %v3271_v53 = vld [vmem:[#allocation5 + $0x1c4] ss:$16 sps:$4 sm:$0xff]   ;;  %v3269_v54 = vld [vmem:[#allocation5 + $0x1c0] ss:$16 sps:$4 sm:$0xff]   ;;  %v3248_v38 = vld [vmem:[#allocation5 + $0x48] ss:$16 sps:$4 sm:$0xff]  }
  0x59   : > { %640 = vmatprep.subr.bf16.mxu1 %v3206_v27  ;;  %1196 = vmatpush1.bf16.msra.mxu0 %v3227_v40  ;;  %v3277_v55 = vld [vmem:[#allocation5 + $0x1a4] ss:$16 sps:$4 sm:$0xff]   ;;  %v3275_v56 = vld [vmem:[#allocation5 + $0x1a0] ss:$16 sps:$4 sm:$0xff]   ;;  %v3256_v39 = vld [vmem:[#allocation5 + $0x2c] ss:$16 sps:$4 sm:$0xff]  }
  0x5a   : > { %1197 = vmatprep.subr.bf16.mxu0 %v3235_v41  ;;  %v3283_v57 = vld [vmem:[#allocation5 + $0x184] ss:$16 sps:$4 sm:$0xff]   ;;  %v3281_v58 = vld [vmem:[#allocation5 + $0x180] ss:$16 sps:$4 sm:$0xff]   ;;  %v3254_v41 = vld [vmem:[#allocation5 + $0x28] ss:$16 sps:$4 sm:$0xff]  }
  0x5b   : > { %v3289_v59 = vld [vmem:[#allocation5 + $0x164] ss:$16 sps:$4 sm:$0xff]   ;;  %v3287_v60 = vld [vmem:[#allocation5 + $0x160] ss:$16 sps:$4 sm:$0xff]   ;;  %s397_s30 = scalar_lea.vmem [#allocation8], %s2814_s25  ;;  %s2701_s17 = scalar_lea.sflag [#allocation4], %s395_s28 }
  0x5c   : > { %641 = vmatpush1.bf16.msra.mxu1 %v3208_v28  ;;  %v3295_v61 = vld [vmem:[#allocation5 + $0x144] ss:$16 sps:$4 sm:$0xff]   ;;  %v3293_v62 = vld [vmem:[#allocation5 + $0x140] ss:$16 sps:$4 sm:$0xff]   ;;  %v3236_v28 = vld [vmem:[#allocation5 + $0x88] ss:$16 sps:$4 sm:$0xff]  }
  0x5d   : > { %642 = vmatprep.subr.bf16.mxu1 %v3209_v29  ;;  %1198 = vmatpush1.bf16.msra.mxu0 %v3233_v42  ;;  %v2817_v1 = vld [vmem:[%s4255_s2] ss:$0 sm:$0xff]  ;;  %v3244_v29 = vld [vmem:[#allocation5 + $0x6c] ss:$16 sps:$4 sm:$0xff]   ;;  %s2714_s12 = sshll.u32 %s397_s30, 4  ;;  %s3597_s29 = smov [#allocation8]   ;;  %s2715_s12 = int_to_ptr.vmem [resolvable:$true] %s2714_s12 }
  0x5e   : > { %1199 = vmatprep.subr.bf16.mxu0 %v3241_v43  ;;  %v3262_v42 = vld [vmem:[#allocation5 + $0xc] ss:$16 sps:$4 sm:$0xff]   ;;  %v3260_v43 = vld [vmem:[#allocation5 + $0x8] ss:$16 sps:$4 sm:$0xff]   ;;  %s3517_s26 = scalar_lea.vmem %s2715_s12, 128  ;;  %s3521_s11 = sshll.u32 %s3597_s29, 4  ;;  %s3522_s11 = int_to_ptr.vmem [resolvable:$false] %s3521_s11 }
  0x5f   : > { %p3518_p10 = scmp.ne.s32.totalorder %s2715_s12, %s3517_s26  ;;  %s3523_s22 = scalar_lea.vmem %s3522_s11, 256 }
  0x60   : > { %643 = vmatpush1.bf16.msra.mxu1 %v3211_v30  ;;  %p3524_p7 = scmp.lt.s32.totalorder %s2715_s12, %s3522_s11  ;;  %p3525_p8 = scmp.lt.s32.totalorder %s3523_s22, %s3517_s26 }
  0x61   : > { %644 = vmatprep.subr.bf16.mxu1 %v3212_v31  ;;  %1200 = vmatpush1.bf16.msra.mxu0 %v3239_v44  ;;  %v3268_v44 = vld [vmem:[#allocation5 + $0x1ec] ss:$16 sps:$4 sm:$0xff]   ;;  %p3519_p2 = pnand %p3518_p10, %p4318_p12 }
  0x62   : > { %1201 = vmatprep.subr.bf16.mxu0 %v3247_v45  ;;  %v3266_v45 = vld [vmem:[#allocation5 + $0x1e8] ss:$16 sps:$4 sm:$0xff]   ;;  %p3526_p11 = por %p3525_p8, %p3524_p7 }
  0x63   : > { %p3520_p4 = pneg %p3519_p2 }
  0x64   : > { %645 = vmatpush1.bf16.msra.mxu1 %v3214_v32 }
  0x65   : > { %1264 = vmatprep.subr.bf16.mxu1 %v3220_v36  ;;  %1202 = vmatpush1.bf16.msra.mxu0 %v3245_v46  ;;  %v3274_v46 = vld [vmem:[#allocation5 + $0x1cc] ss:$16 sps:$4 sm:$0xff]   ;;  %p3527_p0 = pnand %p3526_p11, %p3520_p4 }
  0x66   : > { %1203 = vmatprep.subr.bf16.mxu0 %v3253_v47  ;;  %v3280_v47 = vld [vmem:[#allocation5 + $0x1ac] ss:$16 sps:$4 sm:$0xff]  }
  0x69   : > { %1204 = vmatpush1.bf16.msra.mxu0 %v3251_v48  ;;  %v3278_v48 = vld [vmem:[#allocation5 + $0x1a8] ss:$16 sps:$4 sm:$0xff]  }
  0x6a   : > { %1205 = vmatprep.subr.bf16.mxu0 %v3259_v49  ;;  %v3286_v49 = vld [vmem:[#allocation5 + $0x18c] ss:$16 sps:$4 sm:$0xff]  }
  0x6d   : > { %1206 = vmatpush1.bf16.msra.mxu0 %v3257_v50  ;;  %v3284_v50 = vld [vmem:[#allocation5 + $0x188] ss:$16 sps:$4 sm:$0xff]  }
  0x6e   : > { %1207 = vmatprep.subr.bf16.mxu0 %v3265_v51  ;;  %v3292_v51 = vld [vmem:[#allocation5 + $0x16c] ss:$16 sps:$4 sm:$0xff]  }
  0x71   : > { %1208 = vmatpush2.bf16.msra.mxu0 %v3263_v52  ;;  %v3290_v52 = vld [vmem:[#allocation5 + $0x168] ss:$16 sps:$4 sm:$0xff]  }
  0x72   : > { %1209 = vmatprep.subr.bf16.mxu0 %v3271_v53  ;;  %v3298_v53 = vld [vmem:[#allocation5 + $0x14c] ss:$16 sps:$4 sm:$0xff]  }
  0x75   : > { %1210 = vmatpush2.bf16.msra.mxu0 %v3269_v54  ;;  %v3296_v54 = vld [vmem:[#allocation5 + $0x148] ss:$16 sps:$4 sm:$0xff]  }
  0x76   : > { %1211 = vmatprep.subr.bf16.mxu0 %v3277_v55  ;;  %v3301_v55 = vld [vmem:[#allocation5 + $0x124] ss:$16 sps:$4 sm:$0xff]  }
  0x79   : > { %1212 = vmatpush2.bf16.msra.mxu0 %v3275_v56  ;;  %v3304_v56 = vld [vmem:[#allocation5 + $0x12c] ss:$16 sps:$4 sm:$0xff]  }
  0x7a   : > { %1213 = vmatprep.subr.bf16.mxu0 %v3283_v57  ;;  %v3299_v57 = vld [vmem:[#allocation5 + $0x120] ss:$16 sps:$4 sm:$0xff]  }
  0x7d   : > { %1214 = vmatpush2.bf16.msra.mxu0 %v3281_v58  ;;  %v3302_v58 = vld [vmem:[#allocation5 + $0x128] ss:$16 sps:$4 sm:$0xff]  }
  0x7e   : > { %1215 = vmatprep.subr.bf16.mxu0 %v3289_v59  ;;  %v3307_v59 = vld [vmem:[#allocation5 + $0x104] ss:$16 sps:$4 sm:$0xff]  }
  0x81   : > { %1216 = vmatpush2.bf16.msra.mxu0 %v3287_v60  ;;  %v3310_v60 = vld [vmem:[#allocation5 + $0x10c] ss:$16 sps:$4 sm:$0xff]  }
  0x82   : > { %1217 = vmatprep.subr.bf16.mxu0 %v3295_v61  ;;  %v3305_v61 = vld [vmem:[#allocation5 + $0x100] ss:$16 sps:$4 sm:$0xff]  }
  0x85   : > { %1218 = vmatpush2.bf16.msra.mxu0 %v3293_v62  ;;  %v3308_v62 = vld [vmem:[#allocation5 + $0x108] ss:$16 sps:$4 sm:$0xff]  }
  0x86   : > { %1219 = vmatprep.subr.bf16.mxu0 %v3301_v55 }
  0x89   : > { %1220 = vmatpush2.bf16.msra.mxu0 %v3299_v57 }
  0x8a   : > { %1221 = vmatprep.subr.bf16.mxu0 %v3307_v59  ;;  %v3337_v59 = vld [vmem:[#allocation2 + $0x64] ss:$16 sps:$4 sm:$0xff]  }
  0x8d   : > { %1222 = vmatpush2.bf16.msra.mxu0 %v3305_v61 }
 0x10e   : > { %v3092_v63 = vpop.f32.mrf.mxu0 }
 0x10f   : > { %v488_v15 = vadd.f32 %v3092_v63, %v2817_v1  ;;  %v3313_v63 = vld [vmem:[#allocation2 + $0xe4] ss:$16 sps:$4 sm:$0xff]  }
 0x110   : > { %v479_v0 = vpop.f32.mrf.mxu0  ;;  %1794 = vmatprep.subr.bf16.mxu0 %v3313_v63 }
 0x111   : > { %v480_v3 = vadd.f32 %v2817_v1, %v479_v0  ;;  %v512_v20 = vmax.f32 %v488_v15, 0.0  ;;  %v3316_v0 = vld [vmem:[#allocation2 + $0xec] ss:$16 sps:$4 sm:$0xff]  }
 0x112   : > { %v3093_v2 = vpop.f32.mrf.mxu0 }
 0x113   : > { %v510_v7 = vmax.f32 %v480_v3, 0.0  ;;  %v491_v11 = vadd.f32 %v3093_v2, %v2817_v1 }
 0x114   : > { %v482_v4 = vpop.f32.mrf.mxu0 }
 0x115   : > { %v483_v5 = vadd.f32 %v2817_v1, %v482_v4  ;;  %v513_v18 = vmax.f32 %v491_v11, 0.0 }
 0x116   : > { %v3096_v6 = vpop.f32.mrf.mxu0 }
 0x117   : > { %v511_v8 = vmax.f32 %v483_v5, 0.0  ;;  %v519_v24 = vpack.c.bf16 %v513_v18, %v512_v20  ;;  %v504_v30 = vadd.f32 %v3096_v6, %v2817_v1  ;;  %v538_v6 = vld [vmem:[%s4257_s4] sm:$0x3]  ;;  %v3314_v20 = vld [vmem:[#allocation2 + $0xe8] ss:$16 sps:$4 sm:$0xff]  }
 0x118   : > { %v495_v9 = vpop.f32.mrf.mxu0 }
 0x119   : > { %v518_v12 = vpack.c.bf16 %v511_v8, %v510_v7  ;;  %v496_v21 = vadd.f32 %v2817_v1, %v495_v9  ;;  %v516_v36 = vmax.f32 %v504_v30, 0.0 }
 0x11a   : > { %v3097_v14 = vpop.f32.mrf.mxu0 }
 0x11b   : > { %663 = vmatmul.mubr.bf16.vlgmr.msra.gmra.mxu1 %v518_v12  ;;  %v514_v26 = vmax.f32 %v496_v21, 0.0  ;;  %v507_v31 = vadd.f32 %v3097_v14, %v2817_v1 }
 0x11c   : > { %672 = vmatprep.mubr.bf16.mxu1 %v3595_v33  ;;  %v498_v16 = vpop.f32.mrf.mxu0  ;;  %1265 = vmatpush1.bf16.msra.mxu1 %v3218_v10 }
 0x11d   : > { %1266 = vmatprep.subr.bf16.mxu1 %v3226_v13  ;;  %v499_v22 = vadd.f32 %v2817_v1, %v498_v16  ;;  %v517_v37 = vmax.f32 %v507_v31, 0.0  ;;  %v540_v1 = vlaneseq  ;;  %v3325_v31 = vld [vmem:[#allocation2 + $0xa4] ss:$16 sps:$4 sm:$0xff]  }
 0x11f   : > { %v515_v27 = vmax.f32 %v499_v22, 0.0  ;;  %v521_v40 = vpack.c.bf16 %v517_v37, %v516_v36  ;;  %v3816_v2 = vshrl.u32 %v540_v1, 7  ;;  %v3319_v22 = vld [vmem:[#allocation2 + $0xc4] ss:$16 sps:$4 sm:$0xff]  }
 0x120   : > { %1267 = vmatpush1.bf16.msra.mxu1 %v3224_v17 }
 0x121   : > { %1268 = vmatprep.subr.bf16.mxu1 %v3232_v19  ;;  %v520_v32 = vpack.c.bf16 %v515_v27, %v514_v26  ;;  %v3819_v4 = vsub.s32 1, %v3816_v2  ;;  %v3822_v5 = vsub.s32 0, %v3816_v2  ;;  %v3311_v19 = vld [vmem:[#allocation2 + $0xe0] ss:$16 sps:$4 sm:$0xff]  }
 0x122   : > { %v3317_v27 = vld [vmem:[#allocation2 + $0xc0] ss:$16 sps:$4 sm:$0xff]  }
 0x123   : > { %673 = vmatmul.mubr.bf16.gmra.mxu1 %v519_v24  ;;  %v3828_v8 = vrot.slane %v538_v6, %v3819_v4  ;;  %v3831_v10 = vrot.slane %v538_v6, %v3822_v5 }
 0x124   : > { %682 = vmatprep.mubr.bf16.mxu1 %v3595_v33  ;;  %1269 = vmatpush1.bf16.msra.mxu1 %v3230_v23  ;;  %v3322_v23 = vld [vmem:[#allocation2 + $0xcc] ss:$16 sps:$4 sm:$0xff]  }
 0x125   : > { %1270 = vmatprep.subr.bf16.mxu1 %v3238_v25 }
 0x128   : > { %1271 = vmatpush1.bf16.msra.mxu1 %v3236_v28  ;;  %v3320_v28 = vld [vmem:[#allocation2 + $0xc8] ss:$16 sps:$4 sm:$0xff]  }
 0x129   : > { %1272 = vmatprep.subr.bf16.mxu1 %v3244_v29 }
 0x12b   : > { %683 = vmatmul.mubr.bf16.gmra.mxu1 %v520_v32  ;;  %v3328_v32 = vld [vmem:[#allocation2 + $0xac] ss:$16 sps:$4 sm:$0xff]  }
 0x12c   : > { %692 = vmatprep.mubr.bf16.mxu1 %v3595_v33  ;;  %1273 = vmatpush1.bf16.msra.mxu1 %v3242_v34  ;;  %v3272_v33 = vld [vmem:[#allocation5 + $0x1c8] ss:$16 sps:$4 sm:$0xff]  }
 0x12d   : > { %1274 = vmatprep.subr.bf16.mxu1 %v3250_v35 }
 0x130   : > { %1275 = vmatpush1.bf16.msra.mxu1 %v3248_v38 }
 0x131   : > { %1276 = vmatprep.subr.bf16.mxu1 %v3256_v39  ;;  %v3323_v39 = vld [vmem:[#allocation2 + $0xa0] ss:$16 sps:$4 sm:$0xff]  }
 0x133   : > { %693 = vmatmul.mubr.bf16.gmra.mxu1 %v521_v40  ;;  %v3326_v40 = vld [vmem:[#allocation2 + $0xa8] ss:$16 sps:$4 sm:$0xff]  }
 0x134   : > { %1277 = vmatpush1.bf16.msra.mxu1 %v3254_v41 }
 0x135   : > { %1278 = vmatprep.subr.bf16.mxu1 %v3262_v42 }
 0x138   : > { %1279 = vmatpush1.bf16.msra.mxu1 %v3260_v43  ;;  %v3331_v43 = vld [vmem:[#allocation2 + $0x84] ss:$16 sps:$4 sm:$0xff]  }
 0x139   : > { %1280 = vmatprep.subr.bf16.mxu1 %v3268_v44  ;;  %v3334_v44 = vld [vmem:[#allocation2 + $0x8c] ss:$16 sps:$4 sm:$0xff]  }
 0x13c   : > { %1281 = vmatpush2.bf16.msra.mxu1 %v3266_v45 }
 0x13d   : > { %1282 = vmatprep.subr.bf16.mxu1 %v3274_v46 }
 0x140   : > { %1283 = vmatpush2.bf16.msra.mxu1 %v3272_v33 }
 0x141   : > { %1284 = vmatprep.subr.bf16.mxu1 %v3280_v47 }
 0x144   : > { %1285 = vmatpush2.bf16.msra.mxu1 %v3278_v48 }
 0x145   : > { %1286 = vmatprep.subr.bf16.mxu1 %v3286_v49 }
 0x148   : > { %1287 = vmatpush2.bf16.msra.mxu1 %v3284_v50  ;;  %v3329_v50 = vld [vmem:[#allocation2 + $0x80] ss:$16 sps:$4 sm:$0xff]  }
 0x149   : > { %1288 = vmatprep.subr.bf16.mxu1 %v3292_v51  ;;  %v3332_v51 = vld [vmem:[#allocation2 + $0x88] ss:$16 sps:$4 sm:$0xff]  }
 0x14c   : > { %1289 = vmatpush2.bf16.msra.mxu1 %v3290_v52 }
 0x14d   : > { %1290 = vmatprep.subr.bf16.mxu1 %v3298_v53 }
 0x150   : > { %1291 = vmatpush2.bf16.msra.mxu1 %v3296_v54 }
 0x151   : > { %1292 = vmatprep.subr.bf16.mxu1 %v3304_v56 }
 0x154   : > { %1293 = vmatpush2.bf16.msra.mxu1 %v3302_v58 }
 0x155   : > { %1294 = vmatprep.subr.bf16.mxu1 %v3310_v60  ;;  %v3340_v60 = vld [vmem:[#allocation2 + $0x6c] ss:$16 sps:$4 sm:$0xff]  }
 0x158   : > { %1295 = vmatpush2.bf16.msra.mxu1 %v3308_v62 }
 0x159   : > { %1835 = vmatprep.subr.bf16.mxu1 %v3316_v0 }
 0x1db   : > { %v664_v3 = vpop.f32.mrf.mxu1 }
 0x1dc   : > { %v665_v16 = vadd.f32 %v664_v3, %v3831_v10 }
 0x1dd   : > { %v666_v7 = vpop.f32.mrf.mxu1 }
 0x1de   : > { %v667_v13 = vadd.f32 %v666_v7, %v3828_v8  ;;  %v703_v45 = vrot.slane %v665_v16, 4 }
 0x1df   : > { %v668_v9 = vpop.f32.mrf.mxu1 }
 0x1e0   : > { %v3834_v12 = vadd.f32 %v668_v9, %v3831_v10  ;;  %v709_v29 = vrot.slane %v667_v13, 4  ;;  %v704_v55 = vmax.f32 %v665_v16, %v703_v45  ;;  %v3335_v9 = vld [vmem:[#allocation2 + $0x60] ss:$16 sps:$4 sm:$0xff]  }
 0x1e1   : > { %v670_v11 = vpop.f32.mrf.mxu1 }
 0x1e2   : > { %v671_v14 = vadd.f32 %v670_v11, %v3828_v8  ;;  %v799_v21 = vpack.c.bf16 %v3834_v12, %v665_v16  ;;  %v710_v41 = vmax.f32 %v667_v13, %v709_v29  ;;  %v715_v56 = vrot.slane %v3834_v12, 4  ;;  %v3338_v11 = vld [vmem:[#allocation2 + $0x68] ss:$16 sps:$4 sm:$0xff]  }
 0x1e3   : > { %v674_v15 = vpop.f32.mrf.mxu1 }
 0x1e4   : > { %v800_v18 = vpack.c.bf16 %v671_v14, %v667_v13  ;;  %v721_v30 = vrot.slane %v671_v14, 4  ;;  %v711_v52 = vrot.slane %v710_v41, 2  ;;  %v675_v61 = vadd.f32 %v674_v15, %v3831_v10 }
 0x1e5   : > { %v676_v17 = vpop.f32.mrf.mxu1  ;;  %v705_v13 = vrot.slane %v704_v55, 2 }
 0x1e6   : > { %1223 = vmatprep.mubr.bf16.mxu0 %v800_v18  ;;  %1296 = vmatprep.mubr.bf16.mxu1 %v800_v18  ;;  %v677_v25 = vadd.f32 %v676_v17, %v3828_v8  ;;  %v722_v42 = vmax.f32 %v671_v14, %v721_v30  ;;  %v712_v6 = vmax.f32 %v710_v41, %v711_v52  ;;  %v3343_v17 = vld [vmem:[#allocation2 + $0x44] ss:$16 sps:$4 sm:$0xff]   ;;  %v3346_v18 = vld [vmem:[#allocation2 + $0x4c] ss:$16 sps:$4 sm:$0xff]  }
 0x1e7   : > { %v678_v24 = vpop.f32.mrf.mxu1  ;;  %1224 = vmatmul.mubr.bf16.vlgmr.msra.gmra.mxu0 %v799_v21  ;;  %1297 = vmatmul.mubr.bf16.vlgmr.msra.gmra.mxu1 %v799_v21  ;;  %v3859_v14 = vmax.f32 %v3834_v12, %v715_v56 }
 0x1e8   : > { %1795 = vmatpush1.bf16.msra.mxu0 %v3311_v19  ;;  %1836 = vmatpush1.bf16.msra.mxu1 %v3314_v20  ;;  %v733_v36 = vrot.slane %v677_v25, 4  ;;  %v723_v53 = vrot.slane %v722_v42, 2  ;;  %v3852_v57 = vadd.f32 %v678_v24, %v3831_v10  ;;  %v727_v19 = vrot.slane %v675_v61, 4  ;;  %v3341_v24 = vld [vmem:[#allocation2 + $0x40] ss:$16 sps:$4 sm:$0xff]  }
 0x1e9   : > { %v680_v26 = vpop.f32.mrf.mxu1  ;;  %1796 = vmatprep.subr.bf16.mxu0 %v3319_v22  ;;  %1837 = vmatprep.subr.bf16.mxu1 %v3322_v23  ;;  %v717_v29 = vrot.slane %v3859_v14, 2 }
 0x1ea   : > { %v681_v34 = vadd.f32 %v680_v26, %v3828_v8  ;;  %v734_v33 = vmax.f32 %v677_v25, %v733_v36  ;;  %v724_v7 = vmax.f32 %v722_v42, %v723_v53  ;;  %v801_v15 = vpack.c.bf16 %v3852_v57, %v675_v61  ;;  %v3355_v53 = vld [vmem:[#allocation2 + $0x4] ss:$16 sps:$4 sm:$0xff]  }
 0x1eb   : > { %v3842_v35 = vpop.f32.mrf.mxu1 }
 0x1ec   : > { %v745_v37 = vrot.slane %v681_v34, 4  ;;  %1797 = vmatpush1.bf16.msra.mxu0 %v3317_v27  ;;  %1838 = vmatpush1.bf16.msra.mxu1 %v3320_v28  ;;  %v735_v62 = vrot.slane %v734_v33, 2  ;;  %v802_v0 = vpack.c.bf16 %v681_v34, %v677_v25  ;;  %v713_v25 = vrot.slane %v712_v6, 1  ;;  %v3344_v27 = vld [vmem:[#allocation2 + $0x48] ss:$16 sps:$4 sm:$0xff]  }
 0x1ed   : > { %v686_v38 = vpop.f32.mrf.mxu1  ;;  %1798 = vmatprep.subr.bf16.mxu0 %v3325_v31  ;;  %1839 = vmatprep.subr.bf16.mxu1 %v3328_v32  ;;  %v725_v26 = vrot.slane %v724_v7, 1  ;;  %v3863_v28 = vmax.f32 %v704_v55, %v705_v13  ;;  %v3867_v32 = vmax.f32 %v675_v61, %v727_v19  ;;  %v3871_v36 = vadd.f32 %v3842_v35, %v3831_v10 }
 0x1ee   : > { %v3847_v47 = vadd.f32 %v686_v38, %v3828_v8  ;;  %v746_v48 = vmax.f32 %v681_v34, %v745_v37  ;;  %1233 = vmatprep.mubr.bf16.mxu0 %v802_v0  ;;  %1306 = vmatprep.mubr.bf16.mxu1 %v802_v0  ;;  %v736_v20 = vmax.f32 %v734_v33, %v735_v62  ;;  %v3349_v38 = vld [vmem:[#allocation2 + $0x24] ss:$16 sps:$4 sm:$0xff]   ;;  %v3353_v0 = vld [vmem:[#allocation2] ss:$16 sps:$4 sm:$0xff]  }
 0x1ef   : > { %v3844_v46 = vpop.f32.mrf.mxu1  ;;  %1234 = vmatmul.mubr.bf16.gmra.mxu0 %v801_v15  ;;  %1307 = vmatmul.mubr.bf16.gmra.mxu1 %v801_v15  ;;  %v3878_v45 = vmax.f32 %v712_v6, %v713_v25  ;;  %v3880_v33 = vmax.f32 %v724_v7, %v725_v26  ;;  %v729_v55 = vrot.slane %v3867_v32, 2  ;;  %v3364_v15 = vld [vmem:[#allocation2 + $0x1ec] ss:$16 sps:$4 sm:$0xff]  }
 0x1f0   : > { %1799 = vmatpush1.bf16.msra.mxu0 %v3323_v39  ;;  %1840 = vmatpush1.bf16.msra.mxu1 %v3326_v40  ;;  %v757_v54 = vrot.slane %v3847_v47, 4  ;;  %v747_v1 = vrot.slane %v746_v48, 2  ;;  %v737_v34 = vrot.slane %v736_v20, 1  ;;  %v3352_v39 = vld [vmem:[#allocation2 + $0x2c] ss:$16 sps:$4 sm:$0xff]   ;;  %v3875_v41 = vadd.f32 %v3844_v46, %v3831_v10 }
 0x1f1   : > { %v690_v49 = vpop.f32.mrf.mxu1  ;;  %1800 = vmatprep.subr.bf16.mxu0 %v3331_v43  ;;  %1841 = vmatprep.subr.bf16.mxu1 %v3334_v44 }
 0x1f2   : > { %v758_v63 = vmax.f32 %v3847_v47, %v757_v54  ;;  %v691_v21 = vadd.f32 %v690_v49, %v3828_v8  ;;  %v748_v22 = vmax.f32 %v746_v48, %v747_v1  ;;  %v739_v48 = vrot.slane %v3852_v57, 4  ;;  %v3347_v49 = vld [vmem:[#allocation2 + $0x20] ss:$16 sps:$4 sm:$0xff]   ;;  %v3358_v54 = vld [vmem:[#allocation2 + $0xc] ss:$16 sps:$4 sm:$0xff]  }
 0x1f3   : > { %v3854_v58 = vpop.f32.mrf.mxu1  ;;  %v738_v61 = vmax.f32 %v736_v20, %v737_v34  ;;  %v763_v1 = vrot.slane %v3875_v41, 4 }
 0x1f4   : > { %1801 = vmatpush1.bf16.msra.mxu0 %v3329_v50  ;;  %1842 = vmatpush1.bf16.msra.mxu1 %v3332_v51  ;;  %v759_v16 = vrot.slane %v758_v63, 2  ;;  %v769_v12 = vrot.slane %v691_v21, 4  ;;  %v749_v40 = vrot.slane %v748_v22, 1  ;;  %v804_v43 = vpack.c.bf16 %v691_v21, %v3847_v47  ;;  %v3350_v50 = vld [vmem:[#allocation2 + $0x28] ss:$16 sps:$4 sm:$0xff]  }
 0x1f5   : > { %v696_v3 = vpop.f32.mrf.mxu1  ;;  %1802 = vmatprep.subr.bf16.mxu0 %v3337_v59  ;;  %1843 = vmatprep.subr.bf16.mxu1 %v3340_v60  ;;  %v695_v46 = vadd.f32 %v3854_v58, %v3831_v10  ;;  %v803_v47 = vpack.c.bf16 %v3875_v41, %v3871_v36  ;;  %v751_v58 = vrot.slane %v3871_v36, 4  ;;  %v764_v26 = vmax.f32 %v3875_v41, %v763_v1 }
 0x1f6   : > { %v760_v30 = vmax.f32 %v758_v63, %v759_v16  ;;  %v697_v31 = vadd.f32 %v696_v3, %v3828_v8  ;;  %v770_v37 = vmax.f32 %v691_v21, %v769_v12  ;;  %1243 = vmatprep.mubr.bf16.mxu0 %v804_v43  ;;  %1316 = vmatprep.mubr.bf16.mxu1 %v804_v43  ;;  %v3361_v16 = vld [vmem:[#allocation2 + $0x1e4] ss:$16 sps:$4 sm:$0xff]  }
 0x1f7   : > { %v698_v23 = vpop.f32.mrf.mxu1  ;;  %v3890_v62 = vmax.f32 %v748_v22, %v749_v40  ;;  %1244 = vmatmul.mubr.bf16.gmra.mxu0 %v803_v47  ;;  %1317 = vmatmul.mubr.bf16.gmra.mxu1 %v803_v47  ;;  %v1342_v21 = vpack.c.bf16 %v738_v61, %v738_v61  ;;  %v718_v41 = vmax.f32 %v3859_v14, %v717_v29  ;;  %v3373_v29 = vld [vmem:[#allocation2 + $0x1a4] ss:$16 sps:$4 sm:$0xff]  }
 0x1f8   : > { %1803 = vmatpush1.bf16.msra.mxu0 %v3335_v9  ;;  %1844 = vmatpush1.bf16.msra.mxu1 %v3338_v11  ;;  %v781_v42 = vrot.slane %v697_v31, 4  ;;  %v771_v35 = vrot.slane %v770_v37, 2  ;;  %v761_v51 = vrot.slane %v760_v30, 1  ;;  %v699_v59 = vadd.f32 %v698_v23, %v3831_v10  ;;  %v3356_v10 = vld [vmem:[#allocation2 + $0x8] ss:$16 sps:$4 sm:$0xff]  }
 0x1f9   : > { %1804 = vmatprep.subr.bf16.mxu0 %v3343_v17  ;;  %1845 = vmatprep.subr.bf16.mxu1 %v3346_v18  ;;  %v700_v44 = vpop.f32.mrf.mxu1  ;;  %v775_v11 = vrot.slane %v695_v46, 4  ;;  %v1340_v17 = vpack.c.bf16 %v3880_v33, %v3880_v33  ;;  %v1344_v25 = vpack.c.bf16 %v3890_v62, %v3890_v62  ;;  %v730_v47 = vmax.f32 %v3867_v32, %v729_v55  ;;  %v3371_v32 = vld [vmem:[#allocation2 + $0x1a0] ss:$16 sps:$4 sm:$0xff]   ;;  %v3374_v55 = vld [vmem:[#allocation2 + $0x1a8] ss:$16 sps:$4 sm:$0xff]  }
 0x1fa   : > { %v782_v52 = vmax.f32 %v697_v31, %v781_v42  ;;  %v772_v56 = vmax.f32 %v770_v37, %v771_v35  ;;  %v701_v60 = vadd.f32 %v700_v44, %v3828_v8  ;;  %v740_v8 = vmax.f32 %v3852_v57, %v739_v48 }
 0x1fb   : > { %v762_v9 = vmax.f32 %v760_v30, %v761_v51  ;;  %v787_v19 = vrot.slane %v699_v59, 4  ;;  %v752_v57 = vmax.f32 %v3871_v36, %v751_v58  ;;  %v805_v23 = vpack.c.bf16 %v699_v59, %v695_v46  ;;  %v3362_v30 = vld [vmem:[#allocation2 + $0x1e8] ss:$16 sps:$4 sm:$0xff]  }
 0x1fc   : > { %1805 = vmatpush1.bf16.msra.mxu0 %v3341_v24  ;;  %1846 = vmatpush1.bf16.msra.mxu1 %v3344_v27  ;;  %v783_v63 = vrot.slane %v782_v52, 2  ;;  %v773_v3 = vrot.slane %v772_v56, 1  ;;  %v793_v6 = vrot.slane %v701_v60, 4  ;;  %v806_v7 = vpack.c.bf16 %v701_v60, %v697_v31  ;;  %v3359_v27 = vld [vmem:[#allocation2 + $0x1e0] ss:$16 sps:$4 sm:$0xff]  }
 0x1fd   : > { %1806 = vmatprep.subr.bf16.mxu0 %v3349_v38  ;;  %1847 = vmatprep.subr.bf16.mxu1 %v3352_v39  ;;  %v1338_v24 = vpack.c.bf16 %v3878_v45, %v3878_v45  ;;  %v741_v31 = vrot.slane %v740_v8, 2  ;;  %v1346_v34 = vpack.c.bf16 %v762_v9, %v762_v9  ;;  %v776_v37 = vmax.f32 %v695_v46, %v775_v11  ;;  %v3367_v38 = vld [vmem:[#allocation2 + $0x1c4] ss:$16 sps:$4 sm:$0xff]   ;;  %v3370_v39 = vld [vmem:[#allocation2 + $0x1cc] ss:$16 sps:$4 sm:$0xff]  }
 0x1fe   : > { %v784_v13 = vmax.f32 %v782_v52, %v783_v63  ;;  %v774_v18 = vmax.f32 %v772_v56, %v773_v3  ;;  %v794_v20 = vmax.f32 %v701_v60, %v793_v6  ;;  %1253 = vmatprep.mubr.bf16.mxu0 %v806_v7  ;;  %1326 = vmatprep.mubr.bf16.mxu1 %v806_v7  ;;  %v1436_v40 = vunpack.c.l.b16 %v1340_v17  ;;  %v3365_v46 = vld [vmem:[#allocation2 + $0x1c0] ss:$16 sps:$4 sm:$0xff]   ;;  %v3368_v52 = vld [vmem:[#allocation2 + $0x1c8] ss:$16 sps:$4 sm:$0xff]   ;;  %v3376_v56 = vld [vmem:[#allocation2 + $0x1ac] ss:$16 sps:$4 sm:$0xff]  }
 0x1ff   : > { %v788_v43 = vmax.f32 %v699_v59, %v787_v19  ;;  %v1438_v45 = vunpack.c.l.b16 %v1342_v21  ;;  %v753_v33 = vrot.slane %v752_v57, 2  ;;  %1254 = vmatmul.mubr.bf16.gmra.mxu0 %v805_v23  ;;  %1327 = vmatmul.mubr.bf16.gmra.mxu1 %v805_v23  ;;  %v1434_v35 = vunpack.c.l.b16 %v1338_v24  ;;  %v3377_v24 = vld [vmem:[#allocation2 + $0x180] ss:$16 sps:$4 sm:$0xff]  }
 0x200   : > { %1807 = vmatpush1.bf16.msra.mxu0 %v3347_v49  ;;  %1848 = vmatpush1.bf16.msra.mxu1 %v3350_v50  ;;  %v785_v22 = vrot.slane %v784_v13, 1  ;;  %v795_v12 = vrot.slane %v794_v20, 2  ;;  %v1348_v42 = vpack.c.bf16 %v774_v18, %v774_v18  ;;  %v1440_v49 = vunpack.c.l.b16 %v1344_v25  ;;  %v3380_v25 = vld [vmem:[#allocation2 + $0x188] ss:$16 sps:$4 sm:$0xff]  }
 0x201   : > { %1808 = vmatprep.subr.bf16.mxu0 %v3355_v53  ;;  %1849 = vmatprep.subr.bf16.mxu1 %v3358_v54  ;;  %v765_v50 = vrot.slane %v764_v26, 2  ;;  %v742_v53 = vmax.f32 %v740_v8, %v741_v31  ;;  %v1442_v54 = vunpack.c.l.b16 %v1346_v34  ;;  %v777_v14 = vrot.slane %v776_v37, 2  ;;  %v3388_v31 = vld [vmem:[#allocation2 + $0x16c] ss:$16 sps:$4 sm:$0xff]  }
 0x202   : > { %v786_v36 = vmax.f32 %v784_v13, %v785_v22  ;;  %v796_v44 = vmax.f32 %v794_v20, %v795_v12  ;;  %v1463_v59 = vsel %vm1449_vm3, %v1436_v40, %v1434_v35  ;;  %v1444_v60 = vunpack.c.l.b16 %v1348_v42  ;;  %v3379_v13 = vld [vmem:[#allocation2 + $0x184] ss:$16 sps:$4 sm:$0xff]   ;;  %v3383_v42 = vld [vmem:[#allocation2 + $0x160] ss:$16 sps:$4 sm:$0xff]  }
 0x203   : > { %v789_v61 = vrot.slane %v788_v43, 2  ;;  %v1464_v58 = vsel %vm1451_vm4, %v1438_v45, %v1463_v59  ;;  %v754_v63 = vmax.f32 %v752_v57, %v753_v33  ;;  %v719_v1 = vrot.slane %v718_v41, 1  ;;  %v3391_v45 = vld [vmem:[#allocation2 + $0x144] ss:$16 sps:$4 sm:$0xff]   ;;  %v3394_v33 = vld [vmem:[#allocation2 + $0x14c] ss:$16 sps:$4 sm:$0xff]  }
 0x204   : > { %1809 = vmatpush1.bf16.msra.mxu0 %v3353_v0  ;;  %1850 = vmatpush1.bf16.msra.mxu1 %v3356_v10  ;;  %v1350_v48 = vpack.c.bf16 %v786_v36, %v786_v36  ;;  %v797_v51 = vrot.slane %v796_v44, 1  ;;  %v766_v3 = vmax.f32 %v764_v26, %v765_v50  ;;  %v1465_v7 = vsel %vm1453_vm5, %v1440_v49, %v1464_v58  ;;  %v3395_v58 = vld [vmem:[#allocation2 + $0x120] ss:$16 sps:$4 sm:$0xff]  }
 0x205   : > { %1810 = vmatprep.subr.bf16.mxu0 %v3361_v16  ;;  %1851 = vmatprep.subr.bf16.mxu1 %v3364_v15  ;;  %v707_v10 = vrot.slane %v3863_v28, 1  ;;  %v731_v8 = vrot.slane %v730_v47, 1  ;;  %v778_v9 = vmax.f32 %v776_v37, %v777_v14  ;;  %v1466_v11 = vsel %vm1455_vm6, %v1442_v54, %v1465_v7  ;;  %v3382_v16 = vld [vmem:[#allocation2 + $0x18c] ss:$16 sps:$4 sm:$0xff]   ;;  %v3397_v54 = vld [vmem:[#allocation2 + $0x124] ss:$16 sps:$4 sm:$0xff]  }
 0x206   : > { %v798_v62 = vmax.f32 %v796_v44, %v797_v51  ;;  %v1446_v0 = vunpack.c.l.b16 %v1350_v48  ;;  %v743_v15 = vrot.slane %v742_v53, 1  ;;  %v790_v17 = vmax.f32 %v788_v43, %v789_v61  ;;  %v3386_v43 = vld [vmem:[#allocation2 + $0x168] ss:$16 sps:$4 sm:$0xff]   ;;  %v3400_v14 = vld [vmem:[#allocation2 + $0x12c] ss:$16 sps:$4 sm:$0xff]  }
 0x207   : > { %v1467_v19 = vsel %vm1457_vm7, %v1444_v60, %v1466_v11  ;;  %v755_v20 = vrot.slane %v754_v63, 1  ;;  %v720_v57 = vmax.f32 %v718_v41, %v719_v1  ;;  %v767_v22 = vrot.slane %v766_v3, 1 }
 0x208   : > { %1811 = vmatpush2.bf16.msra.mxu0 %v3359_v27  ;;  %1852 = vmatpush2.bf16.msra.mxu1 %v3362_v30  ;;  %v1352_v6 = vpack.c.bf16 %v798_v62, %v798_v62  ;;  %v1468_v21 = vsel %vm1459_vm8, %v1446_v0, %v1467_v19  ;;  %v732_v26 = vmax.f32 %v730_v47, %v731_v8  ;;  %v779_v12 = vrot.slane %v778_v9, 1  ;;  %v3385_v30 = vld [vmem:[#allocation2 + $0x164] ss:$16 sps:$4 sm:$0xff]   ;;  %v3401_v8 = vld [vmem:[#allocation2 + $0x100] ss:$16 sps:$4 sm:$0xff]  }
 0x209   : > { %1812 = vmatprep.subr.bf16.mxu0 %v3367_v38  ;;  %1853 = vmatprep.subr.bf16.mxu1 %v3370_v39  ;;  %v708_v34 = vmax.f32 %v3863_v28, %v707_v10  ;;  %v744_v37 = vmax.f32 %v742_v53, %v743_v15  ;;  %v791_v36 = vrot.slane %v790_v17, 1  ;;  %v756_v38 = vmax.f32 %v754_v63, %v755_v20  ;;  %v3398_v63 = vld [vmem:[#allocation2 + $0x128] ss:$16 sps:$4 sm:$0xff]   ;;  %v3410_v19 = vld [vmem:[#allocation7 + $0x70] sm:$0xff]  }
 0x20a   : > { %v1448_v18 = vunpack.c.l.b16 %v1352_v6  ;;  %v1339_v39 = vpack.c.bf16 %v720_v57, %v720_v57  ;;  %v768_v40 = vmax.f32 %v766_v3, %v767_v22  ;;  %v1341_v44 = vpack.c.bf16 %v732_v26, %v732_v26  ;;  %v3403_v3 = vld [vmem:[#allocation2 + $0x104] ss:$16 sps:$4 sm:$0xff]   ;;  %v3407_v15 = vld [vmem:[#allocation7 + $0x78] sm:$0xff]  }
 0x20b   : > { %v780_v41 = vmax.f32 %v778_v9, %v779_v12  ;;  %v1337_v48 = vpack.c.bf16 %v708_v34, %v708_v34  ;;  %v1343_v35 = vpack.c.bf16 %v744_v37, %v744_v37  ;;  %v792_v28 = vmax.f32 %v790_v17, %v791_v36  ;;  %v3404_v9 = vld [vmem:[#allocation2 + $0x108] ss:$16 sps:$4 sm:$0xff]   ;;  %v3412_v57 = vld [vmem:[#allocation7 + $0x30] sm:$0xff]   ;;  %v3418_v26 = vld [vmem:[#allocation7 + $0x60] sm:$0xff]  }
 0x20c   : > { %1813 = vmatpush2.bf16.msra.mxu0 %v3365_v46  ;;  %1854 = vmatpush2.bf16.msra.mxu1 %v3368_v52  ;;  %v1469_v23 = vsel %vm1461_vm9, %v1448_v18, %v1468_v21  ;;  %v1345_v49 = vpack.c.bf16 %v756_v38, %v756_v38  ;;  %v1435_v50 = vunpack.c.l.b16 %v1339_v39  ;;  %v1347_v51 = vpack.c.bf16 %v768_v40, %v768_v40  ;;  %v3389_v46 = vld [vmem:[#allocation2 + $0x140] ss:$16 sps:$4 sm:$0xff]   ;;  %v3392_v52 = vld [vmem:[#allocation2 + $0x148] ss:$16 sps:$4 sm:$0xff]  }
 0x20d   : > { %1814 = vmatprep.subr.bf16.mxu0 %v3373_v29  ;;  %1855 = vmatprep.subr.bf16.mxu1 %v3376_v56  ;;  %v1471_v27 = vpack.c.b16 %v1469_v23, %v1469_v23  ;;  %v1437_v47 = vunpack.c.l.b16 %v1341_v44  ;;  %v1349_v53 = vpack.c.bf16 %v780_v41, %v780_v41  ;;  %v1433_v29 = vunpack.c.l.b16 %v1337_v48  ;;  %v3408_v17 = vld [vmem:[#allocation7 + $0x38] sm:$0xff]   ;;  %v3927_v21 = vld [vmem:[#allocation7 + $0xf0] sm:$0xff]   ;;  %v3414_v23 = vld [vmem:[#allocation7 + $0x68] sm:$0xff]  }
 0x20e   : > { %v1439_v56 = vunpack.c.l.b16 %v1343_v35  ;;  %v1351_v59 = vpack.c.bf16 %v792_v28, %v792_v28  ;;  %v1441_v60 = vunpack.c.l.b16 %v1345_v49  ;;  %v1443_v62 = vunpack.c.l.b16 %v1347_v51  ;;  %v3409_v18 = vld [vmem:[#allocation7 + $0xf8] sm:$0xff]   ;;  %v3930_v22 = vld [vmem:[#allocation7 + $0xb0] sm:$0xff]   ;;  %v3936_v12 = vld [vmem:[#allocation7 + $0xa8] sm:$0xff]  }
 0x20f   : > { %1826 = vmatprep.mubr.bf16.mxu0 %v1471_v27  ;;  %1867 = vmatprep.mubr.bf16.mxu1 %v1471_v27  ;;  %v1450_v61 = vsel %vm1449_vm3, %v1435_v50, %v1433_v29  ;;  %v1445_v1 = vunpack.c.l.b16 %v1349_v53  ;;  %v3925_v20 = vld [vmem:[#allocation7 + $0xb8] sm:$0xff]   ;;  %v3420_v27 = vld [vmem:[#allocation7 + $0x20] sm:$0xff]   ;;  %v3426_v38 = vld [vmem:[#allocation7 + $0x50] sm:$0xff]  }
 0x210   : > { %1815 = vmatpush2.bf16.msra.mxu0 %v3371_v32  ;;  %1856 = vmatpush2.bf16.msra.mxu1 %v3374_v55  ;;  %v1452_v0 = vsel %vm1451_vm4, %v1437_v47, %v1450_v61  ;;  %v3406_v32 = vld [vmem:[#allocation2 + $0x10c] ss:$16 sps:$4 sm:$0xff]   ;;  %v1447_v6 = vunpack.c.l.b16 %v1351_v59  ;;  %v3942_v34 = vld [vmem:[#allocation7 + $0xa0] sm:$0xff]   ;;  %v3951_v40 = vld [vmem:[#allocation7 + $0xd0] sm:$0xff]  }
 0x211   : > { %1816 = vmatprep.subr.bf16.mxu0 %v3379_v13  ;;  %1857 = vmatprep.subr.bf16.mxu1 %v3382_v16  ;;  %v1454_v55 = vsel %vm1453_vm5, %v1439_v56, %v1452_v0  ;;  %v3944_v37 = vld [vmem:[#allocation7 + $0xd8] sm:$0xff]   ;;  %4287 = vst [vmem:[#allocation14_spill] sm:$0xff] %v3951_v40  ;;  %v3954_v44 = vld [vmem:[#allocation7 + $0x90] sm:$0xff]   ;;  %v3957_v41 = vld [vmem:[#allocation7 + $0xc8] sm:$0xff]  }
 0x212   : > { %v1456_v7 = vsel %vm1455_vm6, %v1441_v60, %v1454_v55  ;;  %v3424_v36 = vld [vmem:[#allocation7 + $0x18] sm:$0xff]   ;;  %4288 = vst [vmem:[#allocation15_spill] sm:$0xff] %v3954_v44  ;;  %4289 = vst [vmem:[#allocation16_spill] sm:$0xff] %v3957_v41  ;;  %v3960_v48 = vld [vmem:[#allocation7 + $0x88] sm:$0xff]  }
 0x213   : > { %v1458_v10 = vsel %vm1457_vm7, %v1443_v62, %v1456_v7  ;;  %v3948_v39 = vld [vmem:[#allocation7 + $0x98] sm:$0xff]   ;;  %4290 = vst [vmem:[#allocation17_spill] sm:$0xff] %v3960_v48  ;;  %v3963_v35 = vld [vmem:[#allocation7 + $0xc0] sm:$0xff]  }
 0x214   : > { %1817 = vmatpush2.bf16.msra.mxu0 %v3377_v24  ;;  %1858 = vmatpush2.bf16.msra.mxu1 %v3380_v25  ;;  %v1460_v11 = vsel %vm1459_vm8, %v1445_v1, %v1458_v10  ;;  %v3416_v24 = vld [vmem:[#allocation7 + $0x28] sm:$0xff]   ;;  %4286 = vst [vmem:[#allocation13_spill] sm:$0xff] %v3948_v39  ;;  %4291 = vst [vmem:[#allocation18_spill] sm:$0xff] %v3963_v35  ;;  %v3436_v28 = vld [vmem:[#allocation7] sm:$0xff]  }
 0x215   : > { %1818 = vmatprep.subr.bf16.mxu0 %v3385_v30  ;;  %1859 = vmatprep.subr.bf16.mxu1 %v3388_v31  ;;  %v1462_v13 = vsel %vm1461_vm9, %v1447_v6, %v1460_v11  ;;  %v3934_v25 = vld [vmem:[#allocation7 + $0xe8] sm:$0xff]   ;;  %v3940_v30 = vld [vmem:[#allocation7 + $0xe0] sm:$0xff]   ;;  %v3422_v31 = vld [vmem:[#allocation7 + $0x58] sm:$0xff]  }
 0x216   : > { %v1470_v16 = vpack.c.b16 %v1462_v13, %v1462_v13  ;;  %v3966_v49 = vld [vmem:[#allocation7 + $0x80] sm:$0xff]  }
 0x217   : > { %4292 = vst [vmem:[#allocation19_spill] sm:$0xff] %v3966_v49 }
 0x218   : > { %1819 = vmatpush2.bf16.msra.mxu0 %v3383_v42  ;;  %1860 = vmatpush2.bf16.msra.mxu1 %v3386_v43  ;;  %v3428_v42 = vld [vmem:[#allocation7 + $0x10] sm:$0xff]   ;;  %v3430_v43 = vld [vmem:[#allocation7 + $0x48] sm:$0xff]  }
 0x219   : > { %1820 = vmatprep.subr.bf16.mxu0 %v3391_v45  ;;  %1861 = vmatprep.subr.bf16.mxu1 %v3394_v33  ;;  %v3432_v45 = vld [vmem:[#allocation7 + $0x8] sm:$0xff]   ;;  %v3434_v33 = vld [vmem:[#allocation7 + $0x40] sm:$0xff]  }
 0x21c   : > { %1821 = vmatpush2.bf16.msra.mxu0 %v3389_v46  ;;  %1862 = vmatpush2.bf16.msra.mxu1 %v3392_v52 }
 0x21d   : > { %1822 = vmatprep.subr.bf16.mxu0 %v3397_v54  ;;  %1863 = vmatprep.subr.bf16.mxu1 %v3400_v14 }
 0x220   : > { %1823 = vmatpush2.bf16.msra.mxu0 %v3395_v58  ;;  %1864 = vmatpush2.bf16.msra.mxu1 %v3398_v63 }
 0x221   : > { %1824 = vmatprep.subr.bf16.mxu0 %v3403_v3  ;;  %1865 = vmatprep.subr.bf16.mxu1 %v3406_v32 }
 0x224   : > { %1825 = vmatpush2.bf16.msra.mxu0 %v3401_v8  ;;  %1866 = vmatpush2.bf16.msra.mxu1 %v3404_v9 }
 0x225   : > { %3008 = vmatprep.subr.bf16.mxu0 %v3407_v15  ;;  %3098 = vmatprep.subr.bf16.mxu1 %v3409_v18 }
 0x227   : > { %1827 = vmatmul.mubr.bf16.vlgmr.msra.gmra.mxu0 %v1470_v16  ;;  %1868 = vmatmul.mubr.bf16.vlgmr.msra.gmra.mxu1 %v1470_v16  ;;  %v3596_v16 = vmov 1966171168  }
 0x228   : > { %3009 = vmatpush3.bf16.msra.mxu0 %v3408_v17  ;;  %3106 = vmatpush3.bf16.msra.mxu1 %v3925_v20  ;;  %v1885_v15 = vunpack.c.l.s4 %v3596_v16 }
 0x229   : > { %3010 = vmatprep.subr.bf16.mxu0 %v3410_v19  ;;  %3099 = vmatprep.subr.bf16.mxu1 %v3927_v21 }
 0x22a   : > { %v1886_v19 = vunpack.c.0.s8 %v1885_v15 }
 0x22c   : > { %3011 = vmatpush3.bf16.msra.mxu0 %v3412_v57  ;;  %3107 = vmatpush3.bf16.msra.mxu1 %v3930_v22 }
 0x22d   : > { %3012 = vmatprep.subr.bf16.mxu0 %v3414_v23  ;;  %3100 = vmatprep.subr.bf16.mxu1 %v3934_v25 }
 0x230   : > { %3013 = vmatpush3.bf16.msra.mxu0 %v3416_v24  ;;  %3108 = vmatpush3.bf16.msra.mxu1 %v3936_v12 }
 0x231   : > { %3014 = vmatprep.subr.bf16.mxu0 %v3418_v26  ;;  %3101 = vmatprep.subr.bf16.mxu1 %v3940_v30 }
 0x234   : > { %3015 = vmatpush3.bf16.msra.mxu0 %v3420_v27  ;;  %3109 = vmatpush3.bf16.msra.mxu1 %v3942_v34  ;;  %v1889_v27 = vsub.s32 %v1886_v19, %v3816_v2  ;;  %v2140_v19 = vld [vmem:[%s4260_s7] sm:$0xf] }
 0x235   : > { %3016 = vmatprep.subr.bf16.mxu0 %v3422_v31  ;;  %3102 = vmatprep.subr.bf16.mxu1 %v3944_v37 }
 0x238   : > { %3017 = vmatpush3.bf16.msra.mxu0 %v3424_v36  ;;  %3110 = vmatpush3.bf16.msra.mxu1 %v3948_v39 }
 0x239   : > { %3018 = vmatprep.subr.bf16.mxu0 %v3426_v38  ;;  %3103 = vmatprep.subr.bf16.mxu1 %v3951_v40 }
 0x23c   : > { %3019 = vmatpush3.bf16.msra.mxu0 %v3428_v42  ;;  %3111 = vmatpush3.bf16.msra.mxu1 %v3954_v44 }
 0x23d   : > { %3020 = vmatprep.subr.bf16.mxu0 %v3430_v43  ;;  %3104 = vmatprep.subr.bf16.mxu1 %v3957_v41 }
 0x240   : > { %3021 = vmatpush3.bf16.msra.mxu0 %v3432_v45  ;;  %3112 = vmatpush3.bf16.msra.mxu1 %v3960_v48 }
 0x241   : > { %3022 = vmatprep.subr.bf16.mxu0 %v3434_v33  ;;  %3105 = vmatprep.subr.bf16.mxu1 %v3963_v35 }
 0x244   : > { %3023 = vmatpush3.bf16.msra.mxu0 %v3436_v28  ;;  %3113 = vmatpush3.bf16.msra.mxu1 %v3966_v49 }
 0x245   : > { %3048 = vmatprep.subr.bf16.mxu0 %v3409_v18 }
 0x2a7   : > { %v3970_v50 = vpop.f32.mrf.mxu0  ;;  %v3972_v51 = vpop.f32.mrf.mxu1 }
 0x2a8   : > { %4293 = vst [vmem:[#allocation20_spill] sm:$0xff] %v3972_v51 }
 0x2a9   : > { %v3974_v46 = vpop.f32.mrf.mxu0  ;;  %v3976_v52 = vpop.f32.mrf.mxu1 }
 0x2aa   : > { %4294 = vst [vmem:[#allocation21_spill] sm:$0xff] %v3976_v52 }
 0x2ab   : > { %v3978_v47 = vpop.f32.mrf.mxu0  ;;  %v3980_v53 = vpop.f32.mrf.mxu1 }
 0x2ac   : > { %4295 = vst [vmem:[#allocation22_spill] sm:$0xff] %v3980_v53 }
 0x2ad   : > { %v3982_v54 = vpop.f32.mrf.mxu0  ;;  %v3984_v14 = vpop.f32.mrf.mxu1 }
 0x2ae   : > { %4296 = vst [vmem:[#allocation23_spill] sm:$0xff] %v3984_v14 }
 0x2af   : > { %v3986_v29 = vpop.f32.mrf.mxu0  ;;  %v3988_v56 = vpop.f32.mrf.mxu1 }
 0x2b1   : > { %v3990_v59 = vpop.f32.mrf.mxu0  ;;  %v3992_v60 = vpop.f32.mrf.mxu1 }
 0x2b3   : > { %v3994_v61 = vpop.f32.mrf.mxu0  ;;  %v3996_v62 = vpop.f32.mrf.mxu1 }
 0x2b5   : > { %v3998_v58 = vpop.f32.mrf.mxu0  ;;  %v4000_v63 = vpop.f32.mrf.mxu1 }
 0x2b7   : > { %v4002_v0 = vpop.f32.mrf.mxu0  ;;  %v4004_v1 = vpop.f32.mrf.mxu1 }
 0x2b9   : > { %v4006_v3 = vpop.f32.mrf.mxu0  ;;  %v4008_v32 = vpop.f32.mrf.mxu1 }
 0x2bb   : > { %v4010_v55 = vpop.f32.mrf.mxu0  ;;  %v4012_v6 = vpop.f32.mrf.mxu1 }
 0x2bd   : > { %v4014_v7 = vpop.f32.mrf.mxu0  ;;  %v4016_v10 = vpop.f32.mrf.mxu1 }
 0x2bf   : > { %v4018_v8 = vpop.f32.mrf.mxu0  ;;  %v4020_v9 = vpop.f32.mrf.mxu1 }
 0x2c0   : > { %4297 = vst [vmem:[#allocation24_spill] sm:$0xff] %v4018_v8 }
 0x2c1   : > { %v4022_v11 = vpop.f32.mrf.mxu0  ;;  %v4024_v13 = vpop.f32.mrf.mxu1 }
 0x2c3   : > { %v4026_v17 = vpop.f32.mrf.mxu0  ;;  %v4028_v18 = vpop.f32.mrf.mxu1 }
 0x2c4   : > { %4298 = vst [vmem:[#allocation25_spill] sm:$0xff] %v4026_v17  ;;  %4299 = vst [vmem:[#allocation26_spill] sm:$0xff] %v4028_v18 }
 0x2c5   : > { %v4030_v57 = vpop.f32.mrf.mxu0  ;;  %v4032_v23 = vpop.f32.mrf.mxu1 }
 0x2e7   : > { %v1828_v24 = vpop.f32.mrf.mxu0  ;;  %v1869_v26 = vpop.f32.mrf.mxu1 }
 0x2e9   : > { %v1830_v31 = vpop.f32.mrf.mxu0  ;;  %v1871_v36 = vpop.f32.mrf.mxu1 }
 0x2ea   : > { %v1880_v38 = vcombine.low %v1828_v24, %v1830_v31  ;;  %v1881_v42 = vcombine.high %v1828_v24, %v1830_v31  ;;  %v1882_v43 = vcombine.low %v1869_v26, %v1871_v36  ;;  %v1883_v45 = vcombine.high %v1869_v26, %v1871_v36 }
 0x2eb   : > { %v1832_v33 = vpop.f32.mrf.mxu0  ;;  %v1873_v28 = vpop.f32.mrf.mxu1  ;;  %v4039_v24 = vsub.s32 3, %v3816_v2  ;;  %v4042_v26 = vsub.s32 2, %v3816_v2 }
 0x2ec   : > { %v1890_v16 = vrot.slane %v1880_v38, %v1889_v27  ;;  %v1897_v49 = vrot.slane %v1881_v42, %v1889_v27  ;;  %v1904_v35 = vrot.slane %v1882_v43, %v1889_v27  ;;  %v1911_v15 = vrot.slane %v1883_v45, %v1889_v27 }
 0x2ed   : > { %v1833_v48 = vpop.f32.mrf.mxu0  ;;  %v1874_v53 = vpop.f32.mrf.mxu1  ;;  %v4059_v38 = vrot.slane %v2140_v19, %v4039_v24  ;;  %v4062_v2 = vrot.slane %v2140_v19, %v4042_v26 }
 0x2ee   : > { %v1912_v51 = vcombine.low %v1890_v16, %v1904_v35  ;;  %v1913_v41 = vcombine.high %v1890_v16, %v1904_v35  ;;  %v1914_v14 = vcombine.low %v1897_v49, %v1911_v15  ;;  %v1915_v52 = vcombine.high %v1897_v49, %v1911_v15 }
 0x2ef   : > { %v4053_v35 = vrot.slane %v2140_v19, %v3819_v4  ;;  %v4056_v49 = vrot.slane %v2140_v19, %v3822_v5 }
 0x2f0   : > { %v4044_v31 = vrot.slane %v1912_v51, %v1889_v27  ;;  %v4046_v36 = vrot.slane %v1914_v14, %v1889_v27  ;;  %v4048_v48 = vrot.slane %v1913_v41, %v1889_v27  ;;  %v4050_v53 = vrot.slane %v1915_v52, %v1889_v27 }
 0x2f2   : > { %4300 = vst [vmem:[#allocation27_spill] sm:$0xff] %v4044_v31  ;;  %4301 = vst [vmem:[#allocation28_spill] sm:$0xff] %v4048_v48  ;;  %v1955_v51 = vrot.slane %v4044_v31, %v3819_v4  ;;  %v1971_v41 = vrot.slane %v4048_v48, %v3819_v4  ;;  %v1951_v52 = vrot.slane %v4044_v31, %v3822_v5 }
 0x2f3   : > { %v1967_v14 = vrot.slane %v4048_v48, %v3822_v5  ;;  %v1944_v27 = vcombine.high %v4044_v31, %v4044_v31  ;;  %v1946_v42 = vcombine.high %v4048_v48, %v4048_v48  ;;  %v2027_v43 = vrot.slane %v4046_v36, %v4039_v24 }
 0x2f4   : > { %v2043_v45 = vrot.slane %v4050_v53, %v4039_v24  ;;  %v2109_v33 = vadd.f32 %v1955_v51, %v3974_v46  ;;  %v2113_v28 = vadd.f32 %v1971_v41, %v3982_v54  ;;  %v2108_v16 = vadd.f32 %v1951_v52, %v3970_v50 }
 0x2f5   : > { %v2112_v15 = vadd.f32 %v1967_v14, %v3978_v47  ;;  %v1987_v19 = vrot.slane %v1944_v27, %v3819_v4  ;;  %v2003_v44 = vrot.slane %v1946_v42, %v3819_v4  ;;  %v1995_v48 = vrot.slane %v1944_v27, %v4039_v24 }
 0x2f6   : > { %v2011_v31 = vrot.slane %v1946_v42, %v4039_v24  ;;  %v2163_v17 = vadd.f32 %v4053_v35, %v2109_v33  ;;  %v2167_v8 = vadd.f32 %v4053_v35, %v2113_v28  ;;  %v2162_v46 = vadd.f32 %v4056_v49, %v2108_v16 }
 0x2f7   : > { %v2166_v54 = vadd.f32 %v4056_v49, %v2112_v15  ;;  %v2117_v50 = vadd.f32 %v1987_v19, %v3990_v59  ;;  %v2121_v47 = vadd.f32 %v2003_v44, %v3998_v58  ;;  %v2119_v51 = vadd.f32 %v1995_v48, %v3992_v60 }
 0x2f8   : > { %v2123_v41 = vadd.f32 %v2011_v31, %v4000_v63  ;;  %v2195_v52 = vmax.f32 %v2163_v17, 0.0  ;;  %v2199_v14 = vmax.f32 %v2167_v8, 0.0  ;;  %v2194_v40 = vmax.f32 %v2162_v46, 0.0 }
 0x2f9   : > { %v2198_v18 = vmax.f32 %v2166_v54, 0.0  ;;  %v2171_v33 = vadd.f32 %v4053_v35, %v2117_v50  ;;  %v2175_v28 = vadd.f32 %v4053_v35, %v2121_v47  ;;  %v2173_v16 = vadd.f32 %v4059_v38, %v2119_v51 }
 0x2fa   : > { %v2177_v15 = vadd.f32 %v4059_v38, %v2123_v41  ;;  %v2227_v39 = vpack.c.bf16 %v2199_v14, %v2195_v52  ;;  %v1991_v44 = vrot.slane %v1944_v27, %v4042_v26  ;;  %v2007_v60 = vrot.slane %v1946_v42, %v4042_v26 }
 0x2fb   : > { %v2226_v59 = vpack.c.bf16 %v2198_v18, %v2194_v40  ;;  %v2203_v58 = vmax.f32 %v2171_v33, 0.0  ;;  %v2207_v63 = vmax.f32 %v2175_v28, 0.0  ;;  %v2205_v17 = vmax.f32 %v2173_v16, 0.0 }
 0x2fc   : > { %v2209_v8 = vmax.f32 %v2177_v15, 0.0  ;;  %2537 = vmatprep.mubr.bf16.mxu0 %v2227_v39  ;;  %v2118_v31 = vadd.f32 %v1991_v44, %v3988_v56  ;;  %v2122_v48 = vadd.f32 %v2007_v60, %v3996_v62  ;;  %v2127_v19 = vadd.f32 %v2027_v43, %v4008_v32 }
 0x2fd   : > { %v2131_v46 = vadd.f32 %v2043_v45, %v4016_v10  ;;  %2538 = vmatmul.mubr.bf16.vlgmr.msra.gmra.mxu0 %v2226_v59  ;;  %v2231_v54 = vpack.c.bf16 %v2207_v63, %v2203_v58  ;;  %v1983_v18 = vrot.slane %v1944_v27, %v3822_v5  ;;  %v1999_v50 = vrot.slane %v1946_v42, %v3822_v5 }
 0x2fe   : > { %v2233_v40 = vpack.c.bf16 %v2209_v8, %v2205_v17  ;;  %3049 = vmatpush3.bf16.msra.mxu0 %v3925_v20  ;;  %v2172_v47 = vadd.f32 %v4062_v2, %v2118_v31  ;;  %v2176_v39 = vadd.f32 %v4062_v2, %v2122_v48  ;;  %v2181_v56 = vadd.f32 %v4059_v38, %v2127_v19 }
 0x2ff   : > { %v2185_v62 = vadd.f32 %v4059_v38, %v2131_v46  ;;  %2545 = vmatprep.mubr.bf16.mxu0 %v2231_v54  ;;  %v2116_v32 = vadd.f32 %v1983_v18, %v3986_v29  ;;  %v2120_v10 = vadd.f32 %v1999_v50, %v3994_v61  ;;  %v2019_v27 = vrot.slane %v4046_v36, %v3819_v4 }
 0x300   : > { %2610 = vmatprep.mubr.bf16.mxu1 %v2233_v40  ;;  %v2204_v42 = vmax.f32 %v2172_v47, 0.0  ;;  %v2208_v43 = vmax.f32 %v2176_v39, 0.0  ;;  %3050 = vmatprep.subr.bf16.mxu0 %v3927_v21  ;;  %v2213_v20 = vmax.f32 %v2181_v56, 0.0  ;;  %v2035_v52 = vrot.slane %v4050_v53, %v3819_v4 }
 0x301   : > { %v2217_v45 = vmax.f32 %v2185_v62, 0.0  ;;  %v2170_v51 = vadd.f32 %v4056_v49, %v2116_v32  ;;  %v2174_v41 = vadd.f32 %v4056_v49, %v2120_v10  ;;  %v2125_v29 = vadd.f32 %v2019_v27, %v4006_v3 }
 0x302   : > { %v2232_v14 = vpack.c.bf16 %v2208_v43, %v2204_v42  ;;  %3051 = vmatpush3.bf16.msra.mxu0 %v3930_v22  ;;  %v2023_v33 = vrot.slane %v4046_v36, %v4042_v26  ;;  %v2039_v21 = vrot.slane %v4050_v53, %v4042_v26  ;;  %v2129_v15 = vadd.f32 %v2035_v52, %v4014_v7 }
 0x303   : > { %v2237_v61 = vpack.c.bf16 %v2217_v45, %v2213_v20  ;;  %3052 = vmatprep.subr.bf16.mxu0 %v3934_v25  ;;  %v2202_v28 = vmax.f32 %v2170_v51, 0.0  ;;  %v2206_v16 = vmax.f32 %v2174_v41, 0.0  ;;  %v2179_v59 = vadd.f32 %v4053_v35, %v2125_v29  ;;  %v4302_v20 = vld [vmem:[#allocation13_spill] sm:$0xff]  ;;  %v4303_v45 = vld [vmem:[#allocation26_spill] sm:$0xff] }
 0x304   : > { %2611 = vmatmul.mubr.bf16.vlgmr.msra.gmra.mxu1 %v2232_v14  ;;  %v2126_v3 = vadd.f32 %v2023_v33, %v4004_v1  ;;  %v2130_v44 = vadd.f32 %v2039_v21, %v4012_v6  ;;  %v1945_v22 = vcombine.high %v4046_v36, %v4046_v36  ;;  %v1947_v60 = vcombine.high %v4050_v53, %v4050_v53  ;;  %v4305_v33 = vld [vmem:[#allocation24_spill] sm:$0xff]  ;;  %v4306_v21 = vld [vmem:[#allocation25_spill] sm:$0xff] }
 0x305   : > { %2618 = vmatprep.mubr.bf16.mxu1 %v2237_v61  ;;  %v2230_v58 = vpack.c.bf16 %v2206_v16, %v2202_v28  ;;  %v2183_v25 = vadd.f32 %v4053_v35, %v2129_v15  ;;  %v2211_v63 = vmax.f32 %v2179_v59, 0.0  ;;  %v2015_v7 = vrot.slane %v4046_v36, %v3822_v5  ;;  %v4304_v61 = vld [vmem:[#allocation14_spill] sm:$0xff]  ;;  %v4307_v16 = vld [vmem:[#allocation27_spill] sm:$0xff]  ;;  %v4308_v59 = vld [vmem:[#allocation28_spill] sm:$0xff] }
 0x306   : > { %3053 = vmatpush3.bf16.msra.mxu0 %v3936_v12  ;;  %v2180_v1 = vadd.f32 %v4062_v2, %v2126_v3  ;;  %v2184_v6 = vadd.f32 %v4062_v2, %v2130_v44  ;;  %v2059_v17 = vrot.slane %v1945_v22, %v4039_v24  ;;  %v2075_v8 = vrot.slane %v1947_v60, %v4039_v24 }
 0x307   : > { %2546 = vmatmul.mubr.bf16.gmra.mxu0 %v2230_v58  ;;  %v2215_v31 = vmax.f32 %v2183_v25, 0.0  ;;  %3054 = vmatprep.subr.bf16.mxu0 %v3940_v30  ;;  %v2031_v48 = vrot.slane %v4050_v53, %v3822_v5  ;;  %v2124_v19 = vadd.f32 %v2015_v7, %v4002_v0  ;;  %v2051_v36 = vrot.slane %v1945_v22, %v3819_v4  ;;  %v4309_v25 = vld [vmem:[#allocation15_spill] sm:$0xff]  ;;  %v4310_v7 = vld [vmem:[#allocation21_spill] sm:$0xff] }
 0x308   : > { %v2212_v12 = vmax.f32 %v2180_v1, 0.0  ;;  %v2216_v46 = vmax.f32 %v2184_v6, 0.0  ;;  %v2135_v54 = vadd.f32 %v2059_v17, %v4024_v13  ;;  %v2139_v40 = vadd.f32 %v2075_v8, %v4032_v23  ;;  %v4311_v6 = vld [vmem:[#allocation23_spill] sm:$0xff]  ;;  %v4312_v8 = vld [vmem:[#allocation16_spill] sm:$0xff] }
 0x309   : > { %v2235_v18 = vpack.c.bf16 %v2215_v31, %v2211_v63  ;;  %v2128_v50 = vadd.f32 %v2031_v48, %v4010_v55  ;;  %v2178_v47 = vadd.f32 %v4056_v49, %v2124_v19  ;;  %v2067_v30 = vrot.slane %v1947_v60, %v3819_v4  ;;  %v4313_v48 = vld [vmem:[#allocation20_spill] sm:$0xff] }
 0x30a   : > { %v2236_v39 = vpack.c.bf16 %v2216_v46, %v2212_v12  ;;  %v2189_v53 = vadd.f32 %v4059_v38, %v2135_v54  ;;  %v2193_v0 = vadd.f32 %v4059_v38, %v2139_v40  ;;  %3055 = vmatpush3.bf16.msra.mxu0 %v3942_v34  ;;  %v2133_v56 = vadd.f32 %v2051_v36, %v4022_v11 }
 0x30b   : > { %2553 = vmatprep.mubr.bf16.mxu0 %v2235_v18  ;;  %3056 = vmatprep.subr.bf16.mxu0 %v3944_v37  ;;  %v2182_v13 = vadd.f32 %v4056_v49, %v2128_v50  ;;  %v2210_v23 = vmax.f32 %v2178_v47, 0.0  ;;  %v2137_v55 = vadd.f32 %v2067_v30, %v4030_v57  ;;  %v2055_v62 = vrot.slane %v1945_v22, %v4042_v26  ;;  %v4315_v18 = vld [vmem:[#allocation17_spill] sm:$0xff] }
 0x30c   : > { %2619 = vmatmul.mubr.bf16.gmra.mxu1 %v2236_v39  ;;  %v2221_v4 = vmax.f32 %v2189_v53, 0.0  ;;  %v2225_v32 = vmax.f32 %v2193_v0, 0.0  ;;  %v2187_v10 = vadd.f32 %v4053_v35, %v2133_v56  ;;  %v2071_v27 = vrot.slane %v1947_v60, %v4042_v26  ;;  %v4316_v39 = vld [vmem:[#allocation18_spill] sm:$0xff]  ;;  %v4317_v56 = vld [vmem:[#allocation19_spill] sm:$0xff] }
 0x30d   : > { %v2214_v34 = vmax.f32 %v2182_v13, 0.0  ;;  %v2191_v11 = vadd.f32 %v4053_v35, %v2137_v55  ;;  %v2134_v42 = vadd.f32 %v2055_v62, %v4020_v9  ;;  %v2047_v37 = vrot.slane %v1945_v22, %v3822_v5 }
 0x30e   : > { %v2241_v43 = vpack.c.bf16 %v2225_v32, %v2221_v4  ;;  %3057 = vmatpush3.bf16.msra.mxu0 %v4302_v20  ;;  %v2219_v57 = vmax.f32 %v2187_v10, 0.0  ;;  %v2138_v51 = vadd.f32 %v2071_v27, %v4303_v45  ;;  %v2063_v41 = vrot.slane %v1947_v60, %v3822_v5 }
 0x30f   : > { %v2234_v52 = vpack.c.bf16 %v2214_v34, %v2210_v23  ;;  %v2223_v29 = vmax.f32 %v2191_v11, 0.0  ;;  %v2188_v14 = vadd.f32 %v4062_v2, %v2134_v42  ;;  %3058 = vmatprep.subr.bf16.mxu0 %v4304_v61  ;;  %v2132_v35 = vadd.f32 %v2047_v37, %v4305_v33 }
 0x310   : > { %2626 = vmatprep.mubr.bf16.mxu1 %v2241_v43  ;;  %v2192_v9 = vadd.f32 %v4062_v2, %v2138_v51  ;;  %v2136_v28 = vadd.f32 %v2063_v41, %v4306_v21  ;;  %v1963_v15 = vrot.slane %v4307_v16, %v4039_v24  ;;  %v1979_v3 = vrot.slane %v4308_v59, %v4039_v24 }
 0x311   : > { %2554 = vmatmul.mubr.bf16.gmra.mxu0 %v2234_v52  ;;  %v2239_v5 = vpack.c.bf16 %v2223_v29, %v2219_v57  ;;  %v2220_v44 = vmax.f32 %v2188_v14, 0.0  ;;  %v2186_v22 = vadd.f32 %v4056_v49, %v2132_v35  ;;  %v1959_v60 = vrot.slane %v4307_v16, %v4042_v26  ;;  %v2966_v16 = vld [vmem:[%s4262_s9] ss:$0 sm:$0xff] }
 0x312   : > { %v2224_v58 = vmax.f32 %v2192_v9, 0.0  ;;  %3059 = vmatpush3.bf16.msra.mxu0 %v4309_v25  ;;  %v2190_v63 = vadd.f32 %v4056_v49, %v2136_v28  ;;  %v2111_v1 = vadd.f32 %v1963_v15, %v4310_v7  ;;  %v2115_v17 = vadd.f32 %v1979_v3, %v4311_v6  ;;  %v4314_v49 = vld [vmem:[#allocation22_spill] sm:$0xff] }
 0x313   : > { %2561 = vmatprep.mubr.bf16.mxu0 %v2239_v5  ;;  %3060 = vmatprep.subr.bf16.mxu0 %v4312_v8  ;;  %v2218_v24 = vmax.f32 %v2186_v22, 0.0  ;;  %v1975_v31 = vrot.slane %v4308_v59, %v4042_v26  ;;  %v2110_v19 = vadd.f32 %v1959_v60, %v4313_v48 }
 0x314   : > { %v2240_v36 = vpack.c.bf16 %v2224_v58, %v2220_v44  ;;  %v2222_v12 = vmax.f32 %v2190_v63, 0.0  ;;  %v2165_v46 = vadd.f32 %v4059_v38, %v2111_v1  ;;  %v2169_v54 = vadd.f32 %v4059_v38, %v2115_v17 }
 0x315   : > { %v2114_v40 = vadd.f32 %v1975_v31, %v4314_v49  ;;  %v2164_v26 = vadd.f32 %v4062_v2, %v2110_v19 }
 0x316   : > { %2627 = vmatmul.mubr.bf16.gmra.mxu1 %v2240_v36  ;;  %3061 = vmatpush3.bf16.msra.mxu0 %v4315_v18  ;;  %v2197_v50 = vmax.f32 %v2165_v46, 0.0  ;;  %v2201_v47 = vmax.f32 %v2169_v54, 0.0  ;;  %v2238_v30 = vpack.c.bf16 %v2222_v12, %v2218_v24 }
 0x317   : > { %3062 = vmatprep.subr.bf16.mxu0 %v4316_v39  ;;  %v2168_v53 = vadd.f32 %v4062_v2, %v2114_v40  ;;  %v2196_v38 = vmax.f32 %v2164_v26, 0.0 }
 0x318   : > { %v2229_v0 = vpack.c.bf16 %v2201_v47, %v2197_v50 }
 0x319   : > { %2562 = vmatmul.mubr.bf16.gmra.mxu0 %v2238_v30  ;;  %v2200_v13 = vmax.f32 %v2168_v53, 0.0 }
 0x31a   : > { %2602 = vmatprep.mubr.bf16.mxu0 %v2229_v0  ;;  %3063 = vmatpush3.bf16.msra.mxu0 %v4317_v56 }
 0x31b   : > { %v2228_v23 = vpack.c.bf16 %v2200_v13, %v2196_v38 }
 0x321   : > { %2603 = vmatmul.mubr.bf16.vlgmr.msra.gmra.mxu0 %v2228_v23 }
 0x3bd   : > { %v3024_v55 = vpop.f32.mrf.mxu0 }
 0x3bf   : > { %v3025_v62 = vpop.f32.mrf.mxu0 }
 0x3c0   : > { %v3026_v36 = vadd.f32 %v3025_v62, %v3024_v55 }
 0x3c1   : > { %v3027_v4 = vpop.f32.mrf.mxu0 }
 0x3c2   : > { %v2540_v0 = vadd.f32 %v3026_v36, %v2966_v16 }
 0x3c3   : > { %v3028_v32 = vpop.f32.mrf.mxu0 }
 0x3c4   : > { %v3070_v10 = vpop.f32.mrf.mxu1  ;;  %v3029_v39 = vadd.f32 %v3028_v32, %v3027_v4 }
 0x3c6   : > { %v3071_v27 = vpop.f32.mrf.mxu1 }
 0x3c7   : > { %v3030_v34 = vpop.f32.mrf.mxu0  ;;  %v3072_v60 = vadd.f32 %v3071_v27, %v3070_v10 }
 0x3c8   : > { %v3073_v11 = vpop.f32.mrf.mxu1 }
 0x3c9   : > { %v3031_v42 = vpop.f32.mrf.mxu0 }
 0x3ca   : > { %v3074_v37 = vpop.f32.mrf.mxu1  ;;  %v3032_v61 = vadd.f32 %v3031_v42, %v3030_v34  ;;  %v2543_v34 = vadd.f32 %v3029_v39, %v2966_v16 }
 0x3cb   : > { %v3033_v2 = vpop.f32.mrf.mxu0  ;;  %v3075_v63 = vadd.f32 %v3074_v37, %v3073_v11 }
 0x3cc   : > { %v3076_v43 = vpop.f32.mrf.mxu1  ;;  %v2548_v59 = vadd.f32 %v3032_v61, %v2966_v16 }
 0x3cd   : > { %v3034_v20 = vpop.f32.mrf.mxu0 }
 0x3ce   : > { %v3077_v57 = vpop.f32.mrf.mxu1  ;;  %v3035_v35 = vadd.f32 %v3034_v20, %v3033_v2  ;;  %v2613_v1 = vadd.f32 %v3072_v60, %v2548_v59 }
 0x3cf   : > { %v3078_v6 = vadd.f32 %v3077_v57, %v3076_v43 }
 0x3d0   : > { %v3079_v45 = vpop.f32.mrf.mxu1  ;;  %v2551_v44 = vadd.f32 %v3035_v35, %v2966_v16  ;;  %v2647_v50 = vrot.slane %v2613_v1, 4 }
 0x3d1   : > { %v3036_v51 = vpop.f32.mrf.mxu0 }
 0x3d2   : > { %v3080_v41 = vpop.f32.mrf.mxu1  ;;  %v2616_v31 = vadd.f32 %v3075_v63, %v2551_v44  ;;  %v2648_v10 = vmax.f32 %v2613_v1, %v2647_v50 }
 0x3d3   : > { %v3037_v52 = vpop.f32.mrf.mxu0  ;;  %v3081_v48 = vadd.f32 %v3080_v41, %v3079_v45 }
 0x3d4   : > { %v3038_v21 = vadd.f32 %v3037_v52, %v3036_v51  ;;  %v2653_v26 = vrot.slane %v2616_v31, 4  ;;  %v2649_v4 = vrot.slane %v2648_v10, 2 }
 0x3d5   : > { %v3039_v29 = vpop.f32.mrf.mxu0 }
 0x3d6   : > { %v3082_v14 = vpop.f32.mrf.mxu1  ;;  %v2556_v58 = vadd.f32 %v3038_v21, %v2966_v16  ;;  %v2654_v11 = vmax.f32 %v2616_v31, %v2653_v26  ;;  %v2650_v35 = vmax.f32 %v2648_v10, %v2649_v4 }
 0x3d7   : > { %v3040_v33 = vpop.f32.mrf.mxu0 }
 0x3d8   : > { %v3083_v9 = vpop.f32.mrf.mxu1  ;;  %v3041_v15 = vadd.f32 %v3040_v33, %v3039_v29  ;;  %v2621_v12 = vadd.f32 %v3078_v6, %v2556_v58  ;;  %v2655_v51 = vrot.slane %v2654_v11, 2 }
 0x3d9   : > { %v3042_v28 = vpop.f32.mrf.mxu0  ;;  %v3084_v46 = vadd.f32 %v3083_v9, %v3082_v14 }
 0x3da   : > { %v3085_v3 = vpop.f32.mrf.mxu1  ;;  %v2559_v7 = vadd.f32 %v3041_v15, %v2966_v16  ;;  %v2659_v56 = vrot.slane %v2621_v12, 4 }
 0x3db   : > { %v3043_v5 = vpop.f32.mrf.mxu0 }
 0x3dc   : > { %v3044_v22 = vadd.f32 %v3043_v5, %v3042_v28  ;;  %v3086_v17 = vpop.f32.mrf.mxu1  ;;  %v2624_v49 = vadd.f32 %v3081_v48, %v2559_v7  ;;  %v2660_v2 = vmax.f32 %v2621_v12, %v2659_v56  ;;  %v2656_v28 = vmax.f32 %v2654_v11, %v2655_v51 }
 0x3dd   : > { %v3045_v25 = vpop.f32.mrf.mxu0  ;;  %v3087_v40 = vadd.f32 %v3086_v17, %v3085_v3 }
 0x3de   : > { %v2564_v8 = vadd.f32 %v3044_v22, %v2966_v16  ;;  %v2665_v23 = vrot.slane %v2624_v49, 4  ;;  %v2661_v29 = vrot.slane %v2660_v2, 2  ;;  %v2651_v22 = vrot.slane %v2650_v35, 1 }
 0x3df   : > { %v3046_v24 = vpop.f32.mrf.mxu0  ;;  %v2657_v58 = vrot.slane %v2656_v28, 1 }
 0x3e0   : > { %v3047_v19 = vadd.f32 %v3046_v24, %v3045_v25  ;;  %v2629_v47 = vadd.f32 %v3084_v46, %v2564_v8  ;;  %v2666_v20 = vmax.f32 %v2624_v49, %v2665_v23  ;;  %v2662_v59 = vmax.f32 %v2660_v2, %v2661_v29 }
 0x3e1   : > { %v3064_v54 = vpop.f32.mrf.mxu0  ;;  %v2652_v8 = vmax.f32 %v2650_v35, %v2651_v22  ;;  %v2658_v31 = vmax.f32 %v2656_v28, %v2657_v58 }
 0x3e2   : > { %v2567_v18 = vadd.f32 %v3047_v19, %v2966_v16  ;;  %v2671_v27 = vrot.slane %v2629_v47, 4  ;;  %v2667_v61 = vrot.slane %v2666_v20, 2  ;;  %v2663_v7 = vrot.slane %v2662_v59, 1 }
 0x3e3   : > { %v3065_v30 = vpop.f32.mrf.mxu0 }
 0x3e4   : > { %v2632_v53 = vadd.f32 %v3087_v40, %v2567_v18  ;;  %v3066_v38 = vadd.f32 %v3065_v30, %v3064_v54  ;;  %v2672_v32 = vmax.f32 %v2629_v47, %v2671_v27  ;;  %v2668_v3 = vmax.f32 %v2666_v20, %v2667_v61 }
 0x3e5   : > { %v3067_v13 = vpop.f32.mrf.mxu0  ;;  %v2664_v36 = vmax.f32 %v2662_v59, %v2663_v7 }
 0x3e6   : > { %v2605_v55 = vadd.f32 %v3066_v38, %v2540_v0  ;;  %v2677_v42 = vrot.slane %v2632_v53, 4  ;;  %v2673_v9 = vrot.slane %v2672_v32, 2  ;;  %v2669_v1 = vrot.slane %v2668_v3, 1 }
 0x3e7   : > { %v3068_v62 = vpop.f32.mrf.mxu0 }
 0x3e8   : > { %v3069_v37 = vadd.f32 %v3068_v62, %v3067_v13  ;;  %v2635_v43 = vrot.slane %v2605_v55, 4  ;;  %v2678_v41 = vmax.f32 %v2632_v53, %v2677_v42  ;;  %v2674_v60 = vmax.f32 %v2672_v32, %v2673_v9 }
 0x3e9   : > { %v2670_v46 = vmax.f32 %v2668_v3, %v2669_v1 }
 0x3ea   : > { %v2608_v57 = vadd.f32 %v3069_v37, %v2543_v34  ;;  %v2636_v45 = vmax.f32 %v2605_v55, %v2635_v43  ;;  %v2679_v16 = vrot.slane %v2678_v41, 2  ;;  %v2675_v24 = vrot.slane %v2674_v60, 1 }
 0x3ec   : > { %v2641_v52 = vrot.slane %v2608_v57, 4  ;;  %v2637_v14 = vrot.slane %v2636_v45, 2  ;;  %v2680_v25 = vmax.f32 %v2678_v41, %v2679_v16  ;;  %v2676_v49 = vmax.f32 %v2674_v60, %v2675_v24 }
 0x3ee   : > { %v2642_v33 = vmax.f32 %v2608_v57, %v2641_v52  ;;  %v2638_v21 = vmax.f32 %v2636_v45, %v2637_v14  ;;  %v2681_v48 = vrot.slane %v2680_v25, 1 }
 0x3f0   : > { %v2643_v15 = vrot.slane %v2642_v33, 2  ;;  %v2639_v5 = vrot.slane %v2638_v21, 1  ;;  %v2682_v18 = vmax.f32 %v2680_v25, %v2681_v48 }
 0x3f2   : > { %v2644_v44 = vmax.f32 %v2642_v33, %v2643_v15  ;;  %v2640_v6 = vmax.f32 %v2638_v21, %v2639_v5 }
 0x3f4   : > { %v2645_v63 = vrot.slane %v2644_v44, 1 }
 0x3f6   : > { %v2646_v17 = vmax.f32 %v2644_v44, %v2645_v63 }
 0x3f8   : > { %v2691_v19 = vsel %vm1449_vm3, %v2646_v17, %v2640_v6 }
 0x3f9   : > { %v2692_v12 = vsel %vm1451_vm4, %v2652_v8, %v2691_v19 }
 0x3fa   : > { %v2693_v54 = vsel %vm1453_vm5, %v2658_v31, %v2692_v12 }
 0x3fb   : > { %v2694_v40 = vsel %vm1455_vm6, %v2664_v36, %v2693_v54 }
 0x3fc   : > { %v2695_v50 = vsel %vm1457_vm7, %v2670_v46, %v2694_v40 }
 0x3fd   : > { %v2696_v47 = vsel %vm1459_vm8, %v2676_v49, %v2695_v50 }
 0x3fe   : > { %v2697_v30 = vsel %vm1461_vm9, %v2682_v18, %v2696_v47 }
 0x3ff   : > { %2699 = vst [vmem:[%s397_s30] sm:$0xff] %v2697_v30 }
 0x400   : > { %3530 = shalt.err (!%p3527_p0)
}
 0x401   : > { %s3531_s25 = scalar_lea.hbm %s4215_s27, 128  ;;  %s3535_s30 = scalar_lea.hbm %s4263_s10, 256 }
 0x402   : > { %p3532_p6 = scmp.ne.s32.totalorder %s4215_s27, %s3531_s25  ;;  %p3536_p5 = scmp.lt.s32.totalorder %s4215_s27, %s4263_s10 }
 0x403   : > { %p3537_p1 = scmp.lt.s32.totalorder %s3535_s30, %s3531_s25 }
 0x404   : > { %p3533_p9 = pnand %p3532_p6, %p4318_p12 }
 0x405   : > { %p3538_p3 = por %p3537_p1, %p3536_p5 }
 0x406   : > { %p3534_p13 = pneg %p3533_p9 }
 0x408   : > { %p3539_p10 = pnand %p3538_p3, %p3534_p13 }
 0x40a   : > { %3542 = shalt.err (!%p3539_p10)
}
 0x40b   : > { %3126 = dma.vmem_to_hbm [thread:$0]  (%p4318_p12), %s2715_s12, 128, %s4215_s27, %s2701_s17  }
 0x40c PF: > { %p3148_p2 = scmp.ge.s32.totalorder %s3585_s16, 2  ;;  %s2726_s26 = sand.u32 1, %s3573_s13  }
 0x40d   : > { %p4319_p4 = scmp.ne.s32.totalorder %s4279_s24, 0  ;;  %s2727_s29 = scalar_lea.sflag [#allocation4], %s2726_s26 }
 0x40f   : > { %p3139_p7 = pnand %p3148_p2, %p4319_p4 }
 0x411   : > { %p3140_p8 = pneg %p3139_p7 }
 0x413   : > { %3568 = dma.done.wait (%p3140_p8), %s2727_s29, 128  }
 0x414   : > { %3570 = vsyncadd (%p3140_p8), %s2727_s29, 4294967168  ;;  %s4320_s11 = sld [smem:[#allocation12_spill]]  ;;  %p22_p11 = scmp.ge.s32.totalorder %s3678_s19, 4  }
 0x415   : > { %s4321_s13 = smov %s3577_s14  ;;  %s4322_s14 = smov %s3581_s15 }
 0x416   : > { %s4324_s16 = smov %s3678_s19  ;;  %24 = sbr.rel (!%p22_p11) target bundleno = 5 (0x5), region = 108 }
 0x41a   : > { %s4323_s15 = smov %s4320_s11 }
 0x41b   :  { %2732 = vsyncpa [#allocation3], 1 }
 0x41c   :  { %2734 = vsyncpa [#allocation3 + $0x1], 1 }
 0x41d   :  { %2735 = vsyncpa [#allocation6], 1 }
 0x41e   :  { %2736 = vsyncpa [#allocation4], 1 }
 0x41f   :  { %2738 = vsyncpa [#allocation4 + $0x1], 1 }

</bundles_post_ra>
